<compile_context>
chip_gen: v7x
topology: tpu7x:2x2x1
jax: 0.10.0
libtpu: 0.0.40
codegen_flags: <defaults>
</compile_context>

<pallas_src>
import jax
import jax.numpy as jnp
from jax.experimental import pallas as pl
from jax.experimental.pallas import tpu as pltpu

# ----------------------------- configuration -------------------------------
IMG_SIZE = (1, 32, 32)          # (C, H, W); module only supports 32x32 / 64x64
BATCH = 2
LATENT_DIM = 8
NUM_PROP = 4
W_DIM = NUM_PROP                # CSVAE: property latent "w" sized like num_prop
HIDDEN = 128
NUM_PIXELS = IMG_SIZE[0] * IMG_SIZE[1] * IMG_SIZE[2]   # 1024
TRAINING = True                 # PyTorch modules default to training mode

ZW_DIM = LATENT_DIM + W_DIM                 # 12 (packed [z, w] latent)
HEADS = 2 * ZW_DIM + NUM_PROP               # 28 (packed encoder head width)
SLAB = 128                                  # lane-dense packed small-output width
PACK = HEADS + ZW_DIM + NUM_PROP            # 44 useful lanes in the slab
SUBLANE_PAD = 16                            # bf16 sublane tile
MAX_TILE_B = 512                            # v5e-safe batch tile cap
VMEM_LIMIT_BYTES = 32 * 1024 * 1024         # explicit scoped-VMEM limit

# Packed-bias layout: every segment starts on a 128-lane boundary so in-kernel
# static slices never cross vreg boundaries awkwardly.
OFF_E_B1 = 0
OFF_E_B2 = OFF_E_B1 + HIDDEN
OFF_E_BH = OFF_E_B2 + HIDDEN                 # width HEADS (28), segment 128
OFF_DXY_B1 = OFF_E_BH + HIDDEN               # width 2*HIDDEN (256)
OFF_DX_B2 = OFF_DXY_B1 + 2 * HIDDEN
OFF_DX_B3 = OFF_DX_B2 + HIDDEN               # width NUM_PIXELS (1024)
OFF_DY_B2 = OFF_DX_B3 + NUM_PIXELS           # width NUM_PROP (4), segment 128
BIAS_PACK = OFF_DY_B2 + HIDDEN               # 1920


def _relu(x):
    return jnp.maximum(x, 0.0)


def _sigmoid(x):
    # Explicit exp/divide form: exp lands on the EUP slot and the formulation
    # lowers trivially for bf16 on all TPU generations.
    return 1.0 / (1.0 + jnp.exp(-x))


def _round_up(n, m):
    return ((n + m - 1) // m) * m


# ------------------------------ Pallas kernel ------------------------------
def csvae_kernel(
    # data (per batch tile)
    x_ref, eps_ref,
    # weights (trunk + packed heads + merged latent layer + decoders)
    e_w1, e_w2, e_wh, dxy_w1, dx_w2, dx_w3, dy_w2,
    # all biases packed into one lane-aligned (1, BIAS_PACK) f32 array
    b_ref,
    # outputs
    recon_ref, small_ref,
):
    # f32 -> bf16 cast in-VMEM (VPU op hidden under MXU slack); avoids a
    # separate XLA cast pass over the image in HBM.
    x = x_ref[...].astype(jnp.bfloat16)                              # (tb, P)

    # ---- static slices of the packed bias slab (free) ----
    e_b1 = b_ref[:, OFF_E_B1:OFF_E_B1 + HIDDEN]
    e_b2 = b_ref[:, OFF_E_B2:OFF_E_B2 + HIDDEN]
    e_bh = b_ref[:, OFF_E_BH:OFF_E_BH + HEADS]
    dxy_b1 = b_ref[:, OFF_DXY_B1:OFF_DXY_B1 + 2 * HIDDEN]
    dx_b2 = b_ref[:, OFF_DX_B2:OFF_DX_B2 + HIDDEN]
    dx_b3 = b_ref[:, OFF_DX_B3:OFF_DX_B3 + NUM_PIXELS]
    dy_b2 = b_ref[:, OFF_DY_B2:OFF_DY_B2 + NUM_PROP]

    # ---- encoder trunk (bf16 matmuls, f32 accumulation / activations) ----
    h = _relu(jnp.dot(x, e_w1[...], preferred_element_type=jnp.float32) + e_b1)
    h = _relu(jnp.dot(h.astype(jnp.bfloat16), e_w2[...],
                      preferred_element_type=jnp.float32) + e_b2)

    # ---- fused encoder heads: one (HIDDEN, 28) matmul ----
    # packed columns: [z_mean(0:L) | w_mean(L:L+W) | z_lv | w_lv | p_pred]
    heads = jnp.dot(h.astype(jnp.bfloat16), e_wh[...],
                    preferred_element_type=jnp.float32) + e_bh        # (tb, 28)
    zw_mean = heads[:, :ZW_DIM]
    zw_lv = heads[:, ZW_DIM:2 * ZW_DIM]
    # TODO(synk): p_pred activation is encoder-specific in the original repo; kept linear.

    # ---- reparameterization on the packed [z, w] latent (f32 elementwise) ----
    if TRAINING:
        zw_s = zw_mean + jnp.exp(0.5 * zw_lv) * eps_ref[...]
    else:
        zw_s = zw_mean

    # ---- merged decoderX/decoderY first layer: one (tb,12)@(12,256) pass ----
    # columns [0:128]  = decoderX layer-1 over concat(z,w)
    # columns [128:256]= decoderY layer-1 over z (w-rows zero-padded)
    hxy = _relu(jnp.dot(zw_s.astype(jnp.bfloat16), dxy_w1[...],
                        preferred_element_type=jnp.float32) + dxy_b1)  # (tb, 256)
    hx = hxy[:, :HIDDEN]
    hy = hxy[:, HIDDEN:]

    # ---- decoderX tail ----
    hx = _relu(jnp.dot(hx.astype(jnp.bfloat16), dx_w2[...],
                       preferred_element_type=jnp.float32) + dx_b2)
    recon_logits = jnp.dot(hx.astype(jnp.bfloat16), dx_w3[...],
                           preferred_element_type=jnp.float32) + dx_b3
    # bf16 sigmoid + bf16 store: halves vreg pressure for the (tb,1024)
    # activation and halves the writeback DMA bytes.
    recon_ref[...] = _sigmoid(recon_logits.astype(jnp.bfloat16))

    # ---- decoderY tail ----
    y_rec = jnp.dot(hy.astype(jnp.bfloat16), dy_w2[...],
                    preferred_element_type=jnp.float32) + dy_b2

    # ---- packed small outputs: one lane-dense (tb, 128) slab ----
    #   [heads(28) | zw_s(12) | y_rec(4) | zero pad(84)]
    tb = heads.shape[0]
    pad = jnp.zeros((tb, SLAB - PACK), jnp.float32)
    small_ref[...] = jnp.concatenate([heads, zw_s, y_rec, pad], axis=-1)


# --------------------------- parameter construction ------------------------
def init_params(key):
    """Deterministic synthetic weights (fan-in scaled normal, zero biases).

    Weights are bf16 (MXU-native, halves HBM traffic); biases stay f32 and are
    packed into one lane-aligned slab since they feed f32 accumulators.
    """
    def dense(k, fan_in, fan_out):
        w = (jax.random.normal(k, (fan_in, fan_out), jnp.float32)
             / jnp.sqrt(jnp.asarray(fan_in, jnp.float32)))
        b = jnp.zeros((1, fan_out), jnp.float32)
        return w.astype(jnp.bfloat16), b

    ks = jax.random.split(key, 13)
    # encoder trunk
    e_w1, e_b1 = dense(ks[0], NUM_PIXELS, HIDDEN)
    e_w2, e_b2 = dense(ks[1], HIDDEN, HIDDEN)
    # encoder heads -> packed into a single (HIDDEN, 28) weight
    wzm, bzm = dense(ks[2], HIDDEN, LATENT_DIM)
    wwm, bwm = dense(ks[3], HIDDEN, W_DIM)
    wzlv, bzlv = dense(ks[4], HIDDEN, LATENT_DIM)
    wwlv, bwlv = dense(ks[5], HIDDEN, W_DIM)
    wp, bp = dense(ks[6], HIDDEN, NUM_PROP)
    e_wh = jnp.concatenate([wzm, wwm, wzlv, wwlv, wp], axis=1)
    e_bh = jnp.concatenate([bzm, bwm, bzlv, bwlv, bp], axis=1)

    # decoderX layer 1: single Linear over concat(z,w) -> (12, 128)
    w1z, dx_b1 = dense(ks[7], LATENT_DIM, HIDDEN)
    w1w, _ = dense(ks[8], W_DIM, HIDDEN)
    dx_w1 = jnp.concatenate([w1z, w1w], axis=0)
    # decoderY layer 1: acts only on z; zero-pad the w rows, then merge with
    # decoderX layer 1 into one (12, 256) weight (single MXU pass).
    dy_w1, dy_b1 = dense(ks[11], LATENT_DIM, HIDDEN)
    dy_w1_zw = jnp.concatenate(
        [dy_w1, jnp.zeros((W_DIM, HIDDEN), jnp.bfloat16)], axis=0)
    dxy_w1 = jnp.concatenate([dx_w1, dy_w1_zw], axis=1)          # (12, 256)
    dxy_b1 = jnp.concatenate([dx_b1, dy_b1], axis=1)             # (1, 256)

    dx_w2, dx_b2 = dense(ks[9], HIDDEN, HIDDEN)
    dx_w3, dx_b3 = dense(ks[10], HIDDEN, NUM_PIXELS)
    dy_w2, dy_b2 = dense(ks[12], HIDDEN, NUM_PROP)

    weights = [e_w1, e_w2, e_wh, dxy_w1, dx_w2, dx_w3, dy_w2]

    # pack all biases into one (1, BIAS_PACK) f32 array, 128-lane-aligned segments
    biases = jnp.zeros((1, BIAS_PACK), jnp.float32)
    biases = biases.at[:, OFF_E_B1:OFF_E_B1 + HIDDEN].set(e_b1)
    biases = biases.at[:, OFF_E_B2:OFF_E_B2 + HIDDEN].set(e_b2)
    biases = biases.at[:, OFF_E_BH:OFF_E_BH + HEADS].set(e_bh)
    biases = biases.at[:, OFF_DXY_B1:OFF_DXY_B1 + 2 * HIDDEN].set(dxy_b1)
    biases = biases.at[:, OFF_DX_B2:OFF_DX_B2 + HIDDEN].set(dx_b2)
    biases = biases.at[:, OFF_DX_B3:OFF_DX_B3 + NUM_PIXELS].set(dx_b3)
    biases = biases.at[:, OFF_DY_B2:OFF_DY_B2 + NUM_PROP].set(dy_b2)
    return weights, biases


# ------------------------------- wrapper ------------------------------------
def csvae_forward(x, weights, biases, eps_z, eps_w, label=None, tile_b=None):
    """Mirrors CsVAE.forward. `label` accepted for API parity (unused by the
    synthetic encoder)."""
    B = x.shape[0]
    x_flat = x.reshape(B, -1).astype(jnp.float32)   # stays f32; cast in-kernel
    eps_zw = jnp.concatenate([eps_z, eps_w], axis=-1).astype(jnp.float32)

    # Pad batch to a sublane-friendly multiple and pick a batch tile:
    #  * cap at MAX_TILE_B (v5e VMEM-friendly; VMEM limit set explicitly below)
    #  * prefer >= 2 tiles when the batch allows it so ("parallel",) can shard
    #    across both v7x TensorCores.
    b_pad = _round_up(B, SUBLANE_PAD)
    if tile_b is None:
        tile_b = min(MAX_TILE_B, b_pad)
        if b_pad >= 2 * SUBLANE_PAD and b_pad // tile_b < 2:
            tile_b = _round_up(b_pad // 2, SUBLANE_PAD)
    b_pad = _round_up(b_pad, tile_b)
    if b_pad != B:
        x_flat = jnp.pad(x_flat, ((0, b_pad - B), (0, 0)))
        eps_zw = jnp.pad(eps_zw, ((0, b_pad - B), (0, 0)))

    n_tiles = b_pad // tile_b

    def row_map(i):
        return (i, 0)

    def const_map(i):
        return (0, 0)

    in_specs = [
        pl.BlockSpec((tile_b, NUM_PIXELS), row_map),   # x (f32; bf16 cast in-kernel)
        pl.BlockSpec((tile_b, ZW_DIM), row_map),       # eps_zw (f32)
    ]
    # Weights / packed biases: full-array blocks, constant index_map -> loaded
    # once, resident in VMEM across batch tiles.
    in_specs += [pl.BlockSpec(w.shape, const_map) for w in weights]
    in_specs += [pl.BlockSpec(biases.shape, const_map)]
    # TODO(synk): pipeline_mode=pl.Buffered(1) on the constant-indexed weight
    # specs would save ~600 KiB of redundant double-buffering on v7x.

    out_shapes = [
        jax.ShapeDtypeStruct((b_pad, NUM_PIXELS), jnp.bfloat16),  # recon (flat, bf16)
        jax.ShapeDtypeStruct((b_pad, SLAB), jnp.float32),         # packed small outputs
    ]
    out_specs = [
        pl.BlockSpec((tile_b, NUM_PIXELS), row_map),
        pl.BlockSpec((tile_b, SLAB), row_map),
    ]

    # Advisory cost hint for XLA scheduling.
    flops = 2 * b_pad * (NUM_PIXELS * HIDDEN + HIDDEN * HIDDEN + HIDDEN * HEADS
                         + ZW_DIM * 2 * HIDDEN + HIDDEN * HIDDEN
                         + HIDDEN * NUM_PIXELS + HIDDEN * NUM_PROP)
    transcendentals = b_pad * (ZW_DIM + NUM_PIXELS)
    bytes_accessed = int(sum(int(w.size) * w.dtype.itemsize for w in weights)
                         + biases.size * 4
                         + x_flat.size * 4 + eps_zw.size * 4
                         + b_pad * (NUM_PIXELS * 2 + SLAB * 4))

    recon_flat, slab = pl.pallas_call(
        csvae_kernel,
        out_shape=out_shapes,
        grid=(n_tiles,),
        in_specs=in_specs,
        out_specs=out_specs,
        compiler_params=pltpu.CompilerParams(
            dimension_semantics=("parallel",),        # v7x: shard batch tiles over 2 TCs
            vmem_limit_bytes=VMEM_LIMIT_BYTES),
        cost_estimate=pl.CostEstimate(flops=flops,
                                      transcendentals=transcendentals,
                                      bytes_accessed=bytes_accessed),
    )(x_flat, eps_zw, *weights, biases)

    # ---- unpack the lane-dense slab in plain JAX ----
    L, W = LATENT_DIM, W_DIM
    z_mean = slab[:B, 0:L]
    w_mean = slab[:B, L:L + W]
    z_lv = slab[:B, L + W:2 * L + W]
    w_lv = slab[:B, 2 * L + W:2 * (L + W)]
    p_pred = slab[:B, 2 * (L + W):HEADS]
    z_s = slab[:B, HEADS:HEADS + L]
    w_s = slab[:B, HEADS + L:HEADS + L + W]
    y_rec = slab[:B, HEADS + ZW_DIM:HEADS + ZW_DIM + NUM_PROP]

    # recon stays bf16 (keeps the kernel writeback at half the bytes)
    reconstruct = recon_flat[:B].reshape((B,) + IMG_SIZE)   # back to NCHW

    latent_dist_z = (z_mean, z_lv)
    latent_dist_w = (w_mean, w_lv)
    return ((reconstruct, y_rec), latent_dist_z, latent_dist_w, z_s, w_s, p_pred)


# --------------------------------- main --------------------------------------
if __name__ == "__main__":
    key = jax.random.PRNGKey(0)
    k_x, k_p, k_ez, k_ew = jax.random.split(key, 4)

    x = jax.random.normal(k_x, (BATCH,) + IMG_SIZE, jnp.float32)
    weights, biases = init_params(k_p)
    # deterministic reparameterization noise (torch.randn_like equivalent)
    eps_z = jax.random.normal(k_ez, (BATCH, LATENT_DIM), jnp.float32)
    eps_w = jax.random.normal(k_ew, (BATCH, W_DIM), jnp.float32)

    out = csvae_forward(x, weights, biases, eps_z, eps_w)
    jax.block_until_ready(out)

    (recon, y_rec), (zm, zlv), (wm, wlv), zs, ws, pp = out
    assert recon.shape == (BATCH,) + IMG_SIZE
    assert y_rec.shape == (BATCH, NUM_PROP)
    assert zm.shape == (BATCH, LATENT_DIM) and zlv.shape == (BATCH, LATENT_DIM)
    assert wm.shape == (BATCH, W_DIM) and wlv.shape == (BATCH, W_DIM)
    assert zs.shape == (BATCH, LATENT_DIM) and ws.shape == (BATCH, W_DIM)
    assert pp.shape == (BATCH, NUM_PROP)
    assert bool(jnp.all(jnp.isfinite(recon.astype(jnp.float32))))
    assert bool(jnp.all(jnp.isfinite(y_rec)))
    print("KERNEL_OK")
</pallas_src>

<mosaic_0001>
module attributes {stable_mosaic.version = 11 : i64} {
  func.func @csvae_kernel(%arg0: i32, %arg1: memref<16x1024xf32, #tpu.memory_space<vmem>>, %arg2: memref<16x12xf32, #tpu.memory_space<vmem>>, %arg3: memref<1024x128xbf16, #tpu.memory_space<vmem>>, %arg4: memref<128x128xbf16, #tpu.memory_space<vmem>>, %arg5: memref<128x28xbf16, #tpu.memory_space<vmem>>, %arg6: memref<12x256xbf16, #tpu.memory_space<vmem>>, %arg7: memref<128x128xbf16, #tpu.memory_space<vmem>>, %arg8: memref<128x1024xbf16, #tpu.memory_space<vmem>>, %arg9: memref<128x4xbf16, #tpu.memory_space<vmem>>, %arg10: memref<1x1920xf32, #tpu.memory_space<vmem>>, %arg11: memref<16x1024xbf16, #tpu.memory_space<vmem>>, %arg12: memref<16x128xf32, #tpu.memory_space<vmem>>) attributes {dimension_semantics = [#tpu.dimension_semantics<parallel>], iteration_bounds = array<i64: 1>, scalar_prefetch = 0 : i64, scratch_operands = 0 : i64, tpu.core_type = #tpu.core_type<tc>, window_params = [{transform_indices = @transform_0, window_bounds = array<i64: 16, 1024>}, {transform_indices = @transform_1, window_bounds = array<i64: 16, 12>}, {pipeline_mode = #tpu.pipeline_mode<synchronous>, transform_indices = @transform_2, window_bounds = array<i64: 1024, 128>}, {pipeline_mode = #tpu.pipeline_mode<synchronous>, transform_indices = @transform_3, window_bounds = array<i64: 128, 128>}, {pipeline_mode = #tpu.pipeline_mode<synchronous>, transform_indices = @transform_4, window_bounds = array<i64: 128, 28>}, {pipeline_mode = #tpu.pipeline_mode<synchronous>, transform_indices = @transform_5, window_bounds = array<i64: 12, 256>}, {pipeline_mode = #tpu.pipeline_mode<synchronous>, transform_indices = @transform_6, window_bounds = array<i64: 128, 128>}, {pipeline_mode = #tpu.pipeline_mode<synchronous>, transform_indices = @transform_7, window_bounds = array<i64: 128, 1024>}, {pipeline_mode = #tpu.pipeline_mode<synchronous>, transform_indices = @transform_8, window_bounds = array<i64: 128, 4>}, {pipeline_mode = #tpu.pipeline_mode<synchronous>, transform_indices = @transform_9, window_bounds = array<i64: 1, 1920>}, {transform_indices = @transform_10, window_bounds = array<i64: 16, 1024>}, {transform_indices = @transform_11, window_bounds = array<i64: 16, 128>}]} {
    %c0 = arith.constant 0 : index
    %c0_0 = arith.constant 0 : index
    %0 = vector.load %arg1[%c0, %c0_0] : memref<16x1024xf32, #tpu.memory_space<vmem>>, vector<16x1024xf32>
    %1 = arith.truncf %0 : vector<16x1024xf32> to vector<16x1024xbf16>
    %c0_1 = arith.constant 0 : index
    %c0_2 = arith.constant 0 : index
    %2 = vector.load %arg10[%c0_1, %c0_2] : memref<1x1920xf32, #tpu.memory_space<vmem>>, vector<1x128xf32>
    %c0_3 = arith.constant 0 : index
    %c128 = arith.constant 128 : index
    %3 = vector.load %arg10[%c0_3, %c128] : memref<1x1920xf32, #tpu.memory_space<vmem>>, vector<1x128xf32>
    %c0_4 = arith.constant 0 : index
    %c256 = arith.constant 256 : index
    %4 = vector.load %arg10[%c0_4, %c256] : memref<1x1920xf32, #tpu.memory_space<vmem>>, vector<1x28xf32>
    %c0_5 = arith.constant 0 : index
    %c384 = arith.constant 384 : index
    %5 = vector.load %arg10[%c0_5, %c384] : memref<1x1920xf32, #tpu.memory_space<vmem>>, vector<1x256xf32>
    %c0_6 = arith.constant 0 : index
    %c640 = arith.constant 640 : index
    %6 = vector.load %arg10[%c0_6, %c640] : memref<1x1920xf32, #tpu.memory_space<vmem>>, vector<1x128xf32>
    %c0_7 = arith.constant 0 : index
    %c768 = arith.constant 768 : index
    %7 = vector.load %arg10[%c0_7, %c768] : memref<1x1920xf32, #tpu.memory_space<vmem>>, vector<1x1024xf32>
    %c0_8 = arith.constant 0 : index
    %c1792 = arith.constant 1792 : index
    %8 = vector.load %arg10[%c0_8, %c1792] : memref<1x1920xf32, #tpu.memory_space<vmem>>, vector<1x4xf32>
    %c0_9 = arith.constant 0 : index
    %c0_10 = arith.constant 0 : index
    %9 = vector.load %arg3[%c0_9, %c0_10] : memref<1024x128xbf16, #tpu.memory_space<vmem>>, vector<1024x128xbf16>
    %cst = arith.constant dense<0.000000e+00> : vector<16x128xf32>
    %10 = tpu.matmul %1, %9, %cst {dimension_numbers = #tpu.dot_dimension_numbers<[1], [0], [0], [1], [0, 0, 1, 1], [], []>} : vector<16x1024xbf16>, vector<1024x128xbf16>, vector<16x128xf32> -> vector<16x128xf32>
    %11 = vector.broadcast %2 : vector<1x128xf32> to vector<16x128xf32>
    %12 = arith.addf %10, %11 : vector<16x128xf32>
    %cst_11 = arith.constant 0.000000e+00 : f32
    %13 = vector.broadcast %cst_11 : f32 to vector<16x128xf32>
    %14 = arith.maximumf %12, %13 : vector<16x128xf32>
    %15 = arith.truncf %14 : vector<16x128xf32> to vector<16x128xbf16>
    %c0_12 = arith.constant 0 : index
    %c0_13 = arith.constant 0 : index
    %16 = vector.load %arg4[%c0_12, %c0_13] : memref<128x128xbf16, #tpu.memory_space<vmem>>, vector<128x128xbf16>
    %cst_14 = arith.constant dense<0.000000e+00> : vector<16x128xf32>
    %17 = tpu.matmul %15, %16, %cst_14 {dimension_numbers = #tpu.dot_dimension_numbers<[1], [0], [0], [1], [0, 0, 1, 1], [], []>} : vector<16x128xbf16>, vector<128x128xbf16>, vector<16x128xf32> -> vector<16x128xf32>
    %18 = vector.broadcast %3 : vector<1x128xf32> to vector<16x128xf32>
    %19 = arith.addf %17, %18 : vector<16x128xf32>
    %cst_15 = arith.constant 0.000000e+00 : f32
    %20 = vector.broadcast %cst_15 : f32 to vector<16x128xf32>
    %21 = arith.maximumf %19, %20 : vector<16x128xf32>
    %22 = arith.truncf %21 : vector<16x128xf32> to vector<16x128xbf16>
    %c0_16 = arith.constant 0 : index
    %c0_17 = arith.constant 0 : index
    %23 = vector.load %arg5[%c0_16, %c0_17] : memref<128x28xbf16, #tpu.memory_space<vmem>>, vector<128x28xbf16>
    %cst_18 = arith.constant dense<0.000000e+00> : vector<16x28xf32>
    %24 = tpu.matmul %22, %23, %cst_18 {dimension_numbers = #tpu.dot_dimension_numbers<[1], [0], [0], [1], [0, 0, 1, 1], [], []>} : vector<16x128xbf16>, vector<128x28xbf16>, vector<16x28xf32> -> vector<16x28xf32>
    %25 = vector.broadcast %4 : vector<1x28xf32> to vector<16x28xf32>
    %26 = arith.addf %24, %25 : vector<16x28xf32>
    %27 = vector.extract_strided_slice %26 {offsets = [0, 0], sizes = [16, 12], strides = [1, 1]} : vector<16x28xf32> to vector<16x12xf32>
    %28 = vector.extract_strided_slice %26 {offsets = [0, 12], sizes = [16, 12], strides = [1, 1]} : vector<16x28xf32> to vector<16x12xf32>
    %cst_19 = arith.constant 5.000000e-01 : f32
    %29 = vector.broadcast %cst_19 : f32 to vector<16x12xf32>
    %30 = arith.mulf %29, %28 : vector<16x12xf32>
    %31 = math.exp %30 : vector<16x12xf32>
    %c0_20 = arith.constant 0 : index
    %c0_21 = arith.constant 0 : index
    %32 = vector.load %arg2[%c0_20, %c0_21] : memref<16x12xf32, #tpu.memory_space<vmem>>, vector<16x12xf32>
    %33 = arith.mulf %31, %32 : vector<16x12xf32>
    %34 = arith.addf %27, %33 : vector<16x12xf32>
    %35 = arith.truncf %34 : vector<16x12xf32> to vector<16x12xbf16>
    %c0_22 = arith.constant 0 : index
    %c0_23 = arith.constant 0 : index
    %36 = vector.load %arg6[%c0_22, %c0_23] : memref<12x256xbf16, #tpu.memory_space<vmem>>, vector<12x256xbf16>
    %cst_24 = arith.constant dense<0.000000e+00> : vector<16x256xf32>
    %37 = tpu.matmul %35, %36, %cst_24 {dimension_numbers = #tpu.dot_dimension_numbers<[1], [0], [0], [1], [0, 0, 1, 1], [], []>} : vector<16x12xbf16>, vector<12x256xbf16>, vector<16x256xf32> -> vector<16x256xf32>
    %38 = vector.broadcast %5 : vector<1x256xf32> to vector<16x256xf32>
    %39 = arith.addf %37, %38 : vector<16x256xf32>
    %cst_25 = arith.constant 0.000000e+00 : f32
    %40 = vector.broadcast %cst_25 : f32 to vector<16x256xf32>
    %41 = arith.maximumf %39, %40 : vector<16x256xf32>
    %42 = vector.extract_strided_slice %41 {offsets = [0, 0], sizes = [16, 128], strides = [1, 1]} : vector<16x256xf32> to vector<16x128xf32>
    %43 = vector.extract_strided_slice %41 {offsets = [0, 128], sizes = [16, 128], strides = [1, 1]} : vector<16x256xf32> to vector<16x128xf32>
    %44 = arith.truncf %42 : vector<16x128xf32> to vector<16x128xbf16>
    %c0_26 = arith.constant 0 : index
    %c0_27 = arith.constant 0 : index
    %45 = vector.load %arg7[%c0_26, %c0_27] : memref<128x128xbf16, #tpu.memory_space<vmem>>, vector<128x128xbf16>
    %cst_28 = arith.constant dense<0.000000e+00> : vector<16x128xf32>
    %46 = tpu.matmul %44, %45, %cst_28 {dimension_numbers = #tpu.dot_dimension_numbers<[1], [0], [0], [1], [0, 0, 1, 1], [], []>} : vector<16x128xbf16>, vector<128x128xbf16>, vector<16x128xf32> -> vector<16x128xf32>
    %47 = vector.broadcast %6 : vector<1x128xf32> to vector<16x128xf32>
    %48 = arith.addf %46, %47 : vector<16x128xf32>
    %cst_29 = arith.constant 0.000000e+00 : f32
    %49 = vector.broadcast %cst_29 : f32 to vector<16x128xf32>
    %50 = arith.maximumf %48, %49 : vector<16x128xf32>
    %51 = arith.truncf %50 : vector<16x128xf32> to vector<16x128xbf16>
    %c0_30 = arith.constant 0 : index
    %c0_31 = arith.constant 0 : index
    %52 = vector.load %arg8[%c0_30, %c0_31] : memref<128x1024xbf16, #tpu.memory_space<vmem>>, vector<128x1024xbf16>
    %cst_32 = arith.constant dense<0.000000e+00> : vector<16x1024xf32>
    %53 = tpu.matmul %51, %52, %cst_32 {dimension_numbers = #tpu.dot_dimension_numbers<[1], [0], [0], [1], [0, 0, 1, 1], [], []>} : vector<16x128xbf16>, vector<128x1024xbf16>, vector<16x1024xf32> -> vector<16x1024xf32>
    %54 = vector.broadcast %7 : vector<1x1024xf32> to vector<16x1024xf32>
    %55 = arith.addf %53, %54 : vector<16x1024xf32>
    %56 = arith.truncf %55 : vector<16x1024xf32> to vector<16x1024xbf16>
    %cst_33 = arith.constant 0.000000e+00 : bf16
    %57 = vector.broadcast %cst_33 : bf16 to vector<16x1024xbf16>
    %58 = arith.subf %57, %56 : vector<16x1024xbf16>
    %59 = math.exp %58 : vector<16x1024xbf16>
    %cst_34 = arith.constant 1.000000e+00 : bf16
    %60 = vector.broadcast %cst_34 : bf16 to vector<16x1024xbf16>
    %61 = arith.addf %60, %59 : vector<16x1024xbf16>
    %cst_35 = arith.constant 1.000000e+00 : bf16
    %62 = vector.broadcast %cst_35 : bf16 to vector<16x1024xbf16>
    %63 = arith.divf %62, %61 : vector<16x1024xbf16>
    %c0_36 = arith.constant 0 : index
    %c0_37 = arith.constant 0 : index
    %64 = vector.load %arg11[%c0_36, %c0_37] : memref<16x1024xbf16, #tpu.memory_space<vmem>>, vector<16x1024xbf16>
    tpu.vector_store %arg11[%c0_36, %c0_37], %63 {strides = array<i32>} : memref<16x1024xbf16, #tpu.memory_space<vmem>>, vector<16x1024xbf16>,
    %65 = arith.truncf %43 : vector<16x128xf32> to vector<16x128xbf16>
    %c0_38 = arith.constant 0 : index
    %c0_39 = arith.constant 0 : index
    %66 = vector.load %arg9[%c0_38, %c0_39] : memref<128x4xbf16, #tpu.memory_space<vmem>>, vector<128x4xbf16>
    %cst_40 = arith.constant dense<0.000000e+00> : vector<16x4xf32>
    %67 = tpu.matmul %65, %66, %cst_40 {dimension_numbers = #tpu.dot_dimension_numbers<[1], [0], [0], [1], [0, 0, 1, 1], [], []>} : vector<16x128xbf16>, vector<128x4xbf16>, vector<16x4xf32> -> vector<16x4xf32>
    %68 = vector.broadcast %8 : vector<1x4xf32> to vector<16x4xf32>
    %69 = arith.addf %67, %68 : vector<16x4xf32>
    %cst_41 = arith.constant 0.000000e+00 : f32
    %70 = vector.broadcast %cst_41 : f32 to vector<16x84xf32>
    %71 = tpu.concatenate %26, %34, %69, %70 in 1 : vector<16x28xf32>, vector<16x12xf32>, vector<16x4xf32>, vector<16x84xf32> -> vector<16x128xf32>
    %c0_42 = arith.constant 0 : index
    %c0_43 = arith.constant 0 : index
    %72 = vector.load %arg12[%c0_42, %c0_43] : memref<16x128xf32, #tpu.memory_space<vmem>>, vector<16x128xf32>
    tpu.vector_store %arg12[%c0_42, %c0_43], %71 {strides = array<i32>} : memref<16x128xf32, #tpu.memory_space<vmem>>, vector<16x128xf32>,
    return
  }
  func.func @transform_0(%arg0: i32) -> (i32, i32) {
    %c0_i32 = arith.constant 0 : i32
    %c0_i32_0 = arith.constant 0 : i32
    return %arg0, %c0_i32 : i32, i32
  }
  func.func @transform_1(%arg0: i32) -> (i32, i32) {
    %c0_i32 = arith.constant 0 : i32
    %c0_i32_0 = arith.constant 0 : i32
    return %arg0, %c0_i32 : i32, i32
  }
  func.func @transform_2(%arg0: i32) -> (i32, i32) {
    %c0_i32 = arith.constant 0 : i32
    %c0_i32_0 = arith.constant 0 : i32
    %c0_i32_1 = arith.constant 0 : i32
    return %c0_i32, %c0_i32_0 : i32, i32
  }
  func.func @transform_3(%arg0: i32) -> (i32, i32) {
    %c0_i32 = arith.constant 0 : i32
    %c0_i32_0 = arith.constant 0 : i32
    %c0_i32_1 = arith.constant 0 : i32
    return %c0_i32, %c0_i32_0 : i32, i32
  }
  func.func @transform_4(%arg0: i32) -> (i32, i32) {
    %c0_i32 = arith.constant 0 : i32
    %c0_i32_0 = arith.constant 0 : i32
    %c0_i32_1 = arith.constant 0 : i32
    return %c0_i32, %c0_i32_0 : i32, i32
  }
  func.func @transform_5(%arg0: i32) -> (i32, i32) {
    %c0_i32 = arith.constant 0 : i32
    %c0_i32_0 = arith.constant 0 : i32
    %c0_i32_1 = arith.constant 0 : i32
    return %c0_i32, %c0_i32_0 : i32, i32
  }
  func.func @transform_6(%arg0: i32) -> (i32, i32) {
    %c0_i32 = arith.constant 0 : i32
    %c0_i32_0 = arith.constant 0 : i32
    %c0_i32_1 = arith.constant 0 : i32
    return %c0_i32, %c0_i32_0 : i32, i32
  }
  func.func @transform_7(%arg0: i32) -> (i32, i32) {
    %c0_i32 = arith.constant 0 : i32
    %c0_i32_0 = arith.constant 0 : i32
    %c0_i32_1 = arith.constant 0 : i32
    return %c0_i32, %c0_i32_0 : i32, i32
  }
  func.func @transform_8(%arg0: i32) -> (i32, i32) {
    %c0_i32 = arith.constant 0 : i32
    %c0_i32_0 = arith.constant 0 : i32
    %c0_i32_1 = arith.constant 0 : i32
    return %c0_i32, %c0_i32_0 : i32, i32
  }
  func.func @transform_9(%arg0: i32) -> (i32, i32) {
    %c0_i32 = arith.constant 0 : i32
    %c0_i32_0 = arith.constant 0 : i32
    %c0_i32_1 = arith.constant 0 : i32
    return %c0_i32, %c0_i32_0 : i32, i32
  }
  func.func @transform_10(%arg0: i32) -> (i32, i32) {
    %c0_i32 = arith.constant 0 : i32
    %c0_i32_0 = arith.constant 0 : i32
    return %arg0, %c0_i32 : i32, i32
  }
  func.func @transform_11(%arg0: i32) -> (i32, i32) {
    %c0_i32 = arith.constant 0 : i32
    %c0_i32_0 = arith.constant 0 : i32
    return %arg0, %c0_i32 : i32, i32
  }
}

</mosaic_0001>

<bundles_post_ra>
// kernel: tpu_custom_call.1
= control target key start
LH: loop header
LB: loop body
LE: loop exit
PB: predicated region body
PF: predicated region fallthrough
CT: control target
= control target key end

     0   :  { %17 = vsyncpa [#allocation3], 0  ;;  %s3221_s0 = inlined_call_operand.vmem [shape: f32[16,1024], index: 0, kind: input, shape index: {}]   ;;  %s3222_s1 = inlined_call_operand.vmem [shape: f32[16,12], index: 1, kind: input, shape index: {}]   ;;  %s3223_s2 = inlined_call_operand.hbm [shape: bf16[1024,128], index: 2, kind: input, shape index: {}]   ;;  %s3224_s3 = inlined_call_operand.hbm [shape: bf16[128,128], index: 3, kind: input, shape index: {}]   ;;  %s3225_s4 = inlined_call_operand.vmem [shape: bf16[128,28], index: 4, kind: input, shape index: {}]   ;;  %s3226_s5 = inlined_call_operand.vmem [shape: bf16[12,256], index: 5, kind: input, shape index: {}]   ;;  %s3227_s6 = inlined_call_operand.hbm [shape: bf16[128,128], index: 6, kind: input, shape index: {}]   ;;  %s3228_s7 = inlined_call_operand.hbm [shape: bf16[128,1024], index: 7, kind: input, shape index: {}]   ;;  %s3229_s8 = inlined_call_operand.vmem [shape: bf16[128,4], index: 8, kind: input, shape index: {}]   ;;  %s3230_s9 = inlined_call_operand.vmem [shape: f32[1,1920], index: 9, kind: input, shape index: {}]   ;;  %s3231_s10 = inlined_call_operand.hbm [shape: bf16[16,1024], index: 10, kind: output, shape index: {0}]   ;;  %s3232_s11 = inlined_call_operand.hbm [shape: f32[16,128], index: 11, kind: output, shape index: {1}]  }
   0x1   :  { %18 = vsyncpa [#allocation6], 0 }
   0x2   :  { %19 = vsyncpa [#allocation9], 0 }
   0x3   :  { %20 = vsyncpa [#allocation4], 0 }
   0x4   :  { %21 = vsyncpa [#allocation12], 0  ;;  %s2820_s17 = smov [#allocation5]   ;;  %s2821_s19 = smov [#allocation2]  }
   0x5   :  { %s43_s18 = sshll.u32 %s2820_s17, 4  ;;  %s31_s20 = sshll.u32 %s2821_s19, 4  ;;  %s44_s18 = int_to_ptr.vmem [resolvable:$true] %s43_s18  ;;  %s2899_s20 = int_to_ptr.vmem [resolvable:$true] %s31_s20 }
   0x6   :  { %s2678_s23 = scalar_lea.hbm %s3224_s3, 1024 }
   0x7   :  { %p2679_p0 = scmp.ne.s32.totalorder %s3224_s3, %s2678_s23  ;;  %p2682_p1 = scmp.lt.u32.totalorder %s2678_s23, %s3224_s3 }
   0x9   :  { %p2684_p2 = pnand %p2682_p1, %p2679_p0 }
   0xb   :  { %2687 = shalt.err (!%p2684_p2)
}
   0xc   :  { %s2688_s28 = scalar_lea.vmem %s44_s18, 1024  ;;  %p2693_p4 = scmp.lt.s32.totalorder %s44_s18, %s44_s18 }
   0xd   :  { %p2689_p3 = scmp.ne.s32.totalorder %s44_s18, %s2688_s28  ;;  %p2694_p5 = scmp.lt.s32.totalorder %s2688_s28, %s2688_s28 }
   0xf   :  { %p2695_p6 = por %p2694_p5, %p2693_p4 }
  0x11   :  { %p2696_p7 = pnand %p2695_p6, %p2689_p3 }
  0x13   :  { %2699 = shalt.err (!%p2696_p7)
}
  0x14   :  { %s2822_s29 = smov 64   ;;  %s2823_s30 = smov 4  }
  0x15   :  { %49 = dma.hbm_to_vmem [thread:$0]  %s3224_s3, 1024, %s44_s18, [#allocation6], %s2822_s29, %s2822_s29, %s2823_s30  }
  0x16   :  { %s2700_s16 = scalar_lea.hbm %s3223_s2, 8192 }
  0x17   :  { %p2701_p8 = scmp.ne.s32.totalorder %s3223_s2, %s2700_s16  ;;  %p2704_p9 = scmp.lt.u32.totalorder %s2700_s16, %s3223_s2 }
  0x19   :  { %p2706_p10 = pnand %p2704_p9, %p2701_p8 }
  0x1b   :  { %2709 = shalt.err (!%p2706_p10)
}
  0x1c   :  { %s2710_s23 = scalar_lea.vmem %s2899_s20, 8192  ;;  %p2715_p12 = scmp.lt.s32.totalorder %s2899_s20, %s2899_s20 }
  0x1d   :  { %p2711_p11 = scmp.ne.s32.totalorder %s2899_s20, %s2710_s23  ;;  %p2716_p13 = scmp.lt.s32.totalorder %s2710_s23, %s2710_s23 }
  0x1f   :  { %p2717_p0 = por %p2716_p13, %p2715_p12 }
  0x21   :  { %p2718_p1 = pnand %p2717_p0, %p2711_p11 }
  0x23   :  { %2721 = shalt.err (!%p2718_p1)
}
  0x24   :  { %37 = dma.hbm_to_vmem [thread:$0]  %s3223_s2, 8192, %s2899_s20, [#allocation3], %s2822_s29, %s2822_s29, %s2823_s30  }
  0x25   :  { %s2824_s24 = smov [#allocation7]   ;;  %s2825_s26 = smov [#allocation8]  }
  0x26   :  { %s59_s25 = sshll.u32 %s2824_s24, 4  ;;  %s71_s27 = sshll.u32 %s2825_s26, 4  ;;  %s60_s25 = int_to_ptr.vmem [resolvable:$true] %s59_s25  ;;  %s2936_s27 = int_to_ptr.vmem [resolvable:$true] %s71_s27 }
  0x27   :  { %s2722_s13 = scalar_lea.hbm %s3227_s6, 1024 }
  0x28   :  { %p2723_p2 = scmp.ne.s32.totalorder %s3227_s6, %s2722_s13  ;;  %p2726_p3 = scmp.lt.u32.totalorder %s2722_s13, %s3227_s6 }
  0x2a   :  { %p2728_p4 = pnand %p2726_p3, %p2723_p2 }
  0x2c   :  { %2731 = shalt.err (!%p2728_p4)
}
  0x2d   :  { %s2732_s2 = scalar_lea.vmem %s60_s25, 1024  ;;  %p2737_p6 = scmp.lt.s32.totalorder %s60_s25, %s60_s25 }
  0x2e   :  { %p2733_p5 = scmp.ne.s32.totalorder %s60_s25, %s2732_s2  ;;  %p2738_p7 = scmp.lt.s32.totalorder %s2732_s2, %s2732_s2 }
  0x30   :  { %p2739_p8 = por %p2738_p7, %p2737_p6 }
  0x32   :  { %p2740_p9 = pnand %p2739_p8, %p2733_p5 }
  0x34   :  { %2743 = shalt.err (!%p2740_p9)
}
  0x35   :  { %65 = dma.hbm_to_vmem [thread:$0]  %s3227_s6, 1024, %s60_s25, [#allocation6], %s2822_s29, %s2822_s29, %s2823_s30  }
  0x36   :  { %s2744_s23 = scalar_lea.hbm %s3228_s7, 8192 }
  0x37   :  { %p2745_p10 = scmp.ne.s32.totalorder %s3228_s7, %s2744_s23  ;;  %p2748_p11 = scmp.lt.u32.totalorder %s2744_s23, %s3228_s7 }
  0x39   :  { %p2750_p12 = pnand %p2748_p11, %p2745_p10 }
  0x3b   :  { %2753 = shalt.err (!%p2750_p12)
}
  0x3c   :  { %s2754_s28 = scalar_lea.vmem %s2936_s27, 8192  ;;  %p2759_p0 = scmp.lt.s32.totalorder %s2936_s27, %s2936_s27 }
  0x3d   :  { %p2755_p13 = scmp.ne.s32.totalorder %s2936_s27, %s2754_s28  ;;  %p2760_p1 = scmp.lt.s32.totalorder %s2754_s28, %s2754_s28 }
  0x3f   :  { %p2761_p2 = por %p2760_p1, %p2759_p0 }
  0x41   :  { %p2762_p3 = pnand %p2761_p2, %p2755_p13 }
  0x43   :  { %2765 = shalt.err (!%p2762_p3)
}
  0x44   :  { %s2826_s6 = smov 512   ;;  %s2827_s29 = smov 32  }
  0x45   :  { %77 = dma.hbm_to_vmem [thread:$0]  %s3228_s7, 8192, %s2936_s27, [#allocation9], %s2826_s6, %s2826_s6, %s2827_s29  }
  0x46   :  { %2810 = dma.done.wait [#allocation3], 8192  }
  0x47   :  { %2811 = vsyncadd [#allocation3], 4294959104 }
  0x48   :  { %2812 = dma.done.wait [#allocation6], 2048  }
  0x49   :  { %2813 = vsyncadd [#allocation6], 4294965248 }
  0x4a   :  { %2814 = dma.done.wait [#allocation9], 8192  }
  0x4b   :  { %2815 = vsyncadd [#allocation9], 4294959104  ;;  %v2543_v0 = vld [vmem:[#allocation2 + $0x40] sm:$0xff]   ;;  %v2547_v4 = vld [vmem:[#allocation2 + $0x48] sm:$0xff]   ;;  %vm2829_vm0 = vmmov 0   ;;  %s2830_s20 = smov 12  }
  0x4c   :  { %v2544_v1 = vld [vmem:[#allocation2 + $0xc0] sm:$0xff]   ;;  %2320 = vmatprep.subr.bf16.mxu0 %v2543_v0  ;;  %v2548_v5 = vld [vmem:[#allocation2 + $0xc8] sm:$0xff]   ;;  %v2551_v8 = vld [vmem:[#allocation2 + $0x50] sm:$0xff]   ;;  %vm1091_vm1 = vcmask 1045504   ;;  %s2832_s26 = smov 116   ;;  %vm1087_vm2 = vcmask 97280  }
  0x4d   :  { %v2545_v2 = vld [vmem:[#allocation2] sm:$0xff]   ;;  %2342 = vmatprep.subr.bf16.mxu1 %v2544_v1  ;;  %v2549_v6 = vld [vmem:[#allocation2 + $0x8] sm:$0xff]   ;;  %v2552_v9 = vld [vmem:[#allocation2 + $0xd0] sm:$0xff]  }
  0x4e   :  { %v2546_v3 = vld [vmem:[#allocation2 + $0x80] sm:$0xff]   ;;  %2321 = vmatpush3.bf16.msra.mxu0 %v2545_v2  ;;  %v2550_v7 = vld [vmem:[#allocation2 + $0x88] sm:$0xff]   ;;  %v2553_v10 = vld [vmem:[#allocation2 + $0x10] sm:$0xff]  }
  0x4f   :  { %2343 = vmatpush3.bf16.msra.mxu1 %v2546_v3  ;;  %2322 = vmatprep.subr.bf16.mxu0 %v2547_v4  ;;  %v2554_v11 = vld [vmem:[#allocation2 + $0x90] sm:$0xff]   ;;  %v2555_v12 = vld [vmem:[#allocation2 + $0x58] sm:$0xff]   ;;  %v2559_v16 = vld [vmem:[#allocation2 + $0x60] sm:$0xff]  }
  0x50   :  { %2344 = vmatprep.subr.bf16.mxu1 %v2548_v5  ;;  %v2556_v13 = vld [vmem:[#allocation2 + $0xd8] sm:$0xff]   ;;  %v2560_v17 = vld [vmem:[#allocation2 + $0xe0] sm:$0xff]   ;;  %v2563_v20 = vld [vmem:[#allocation2 + $0x68] sm:$0xff]  }
  0x51   :  { %v2557_v14 = vld [vmem:[#allocation2 + $0x18] sm:$0xff]   ;;  %v2561_v18 = vld [vmem:[#allocation2 + $0x20] sm:$0xff]   ;;  %v2564_v21 = vld [vmem:[#allocation2 + $0xe8] sm:$0xff]  }
  0x52   :  { %2323 = vmatpush3.bf16.msra.mxu0 %v2549_v6  ;;  %v2558_v15 = vld [vmem:[#allocation2 + $0x98] sm:$0xff]   ;;  %v2562_v19 = vld [vmem:[#allocation2 + $0xa0] sm:$0xff]   ;;  %v2565_v22 = vld [vmem:[#allocation2 + $0x28] sm:$0xff]  }
  0x53   :  { %2345 = vmatpush3.bf16.msra.mxu1 %v2550_v7  ;;  %2324 = vmatprep.subr.bf16.mxu0 %v2551_v8  ;;  %v2566_v23 = vld [vmem:[#allocation2 + $0xa8] sm:$0xff]   ;;  %v2567_v24 = vld [vmem:[#allocation2 + $0x70] sm:$0xff]   ;;  %v2571_v28 = vld [vmem:[#allocation2 + $0x78] sm:$0xff]  }
  0x54   :  { %2346 = vmatprep.subr.bf16.mxu1 %v2552_v9  ;;  %v2568_v25 = vld [vmem:[#allocation2 + $0xf0] sm:$0xff]   ;;  %v2572_v29 = vld [vmem:[#allocation2 + $0xf8] sm:$0xff]   ;;  %v97_v32 = vld [vmem:[%s3221_s0 + $0x8] sm:$0xff] }
  0x55   :  { %v2569_v26 = vld [vmem:[#allocation2 + $0x30] sm:$0xff]   ;;  %v2573_v30 = vld [vmem:[#allocation2 + $0x38] sm:$0xff]   ;;  %v105_v33 = vld [vmem:[%s3221_s0 + $0x48] sm:$0xff] }
  0x56   :  { %2325 = vmatpush3.bf16.msra.mxu0 %v2553_v10  ;;  %v2570_v27 = vld [vmem:[#allocation2 + $0xb0] sm:$0xff]   ;;  %v2574_v31 = vld [vmem:[#allocation2 + $0xb8] sm:$0xff]   ;;  %v113_v35 = vpack.c.bf16 %v105_v33, %v97_v32  ;;  %v96_v37 = vld [vmem:[%s3221_s0] sm:$0xff] }
  0x57   :  { %2347 = vmatpush3.bf16.msra.mxu1 %v2554_v11  ;;  %2326 = vmatprep.subr.bf16.mxu0 %v2555_v12  ;;  %v99_v34 = vld [vmem:[%s3221_s0 + $0x18] sm:$0xff]  ;;  %v104_v38 = vld [vmem:[%s3221_s0 + $0x40] sm:$0xff]  ;;  %v98_v41 = vld [vmem:[%s3221_s0 + $0x10] sm:$0xff] }
  0x58   :  { %2348 = vmatprep.subr.bf16.mxu1 %v2556_v13  ;;  %v107_v36 = vld [vmem:[%s3221_s0 + $0x58] sm:$0xff]  ;;  %v112_v40 = vpack.c.bf16 %v104_v38, %v96_v37  ;;  %v106_v42 = vld [vmem:[%s3221_s0 + $0x50] sm:$0xff]  ;;  %677 = vmatprep.mubr.bf16.mxu0 %v113_v35  ;;  %v2575_v44 = vld [vmem:[#allocation2 + $0x140] sm:$0xff]  }
  0x59   :  { %v115_v39 = vpack.c.bf16 %v107_v36, %v99_v34  ;;  %v114_v43 = vpack.c.bf16 %v106_v42, %v98_v41  ;;  %v2576_v45 = vld [vmem:[#allocation2 + $0x1c0] sm:$0xff]   ;;  %v2579_v48 = vld [vmem:[#allocation2 + $0x148] sm:$0xff]   ;;  %v2583_v52 = vld [vmem:[#allocation2 + $0x150] sm:$0xff]  }
  0x5a   :  { %2327 = vmatpush3.bf16.msra.mxu0 %v2557_v14  ;;  %v2577_v46 = vld [vmem:[#allocation2 + $0x100] sm:$0xff]   ;;  %v2580_v49 = vld [vmem:[#allocation2 + $0x1c8] sm:$0xff]   ;;  %v2584_v53 = vld [vmem:[#allocation2 + $0x1d0] sm:$0xff]  }
  0x5b   :  { %2349 = vmatpush3.bf16.msra.mxu1 %v2558_v15  ;;  %2328 = vmatprep.subr.bf16.mxu0 %v2559_v16  ;;  %v2578_v47 = vld [vmem:[#allocation2 + $0x180] sm:$0xff]   ;;  %v2581_v50 = vld [vmem:[#allocation2 + $0x108] sm:$0xff]   ;;  %v2585_v54 = vld [vmem:[#allocation2 + $0x110] sm:$0xff]  }
  0x5c   :  { %2350 = vmatprep.subr.bf16.mxu1 %v2560_v17  ;;  %718 = vmatprep.mubr.bf16.mxu1 %v115_v39  ;;  %v2582_v51 = vld [vmem:[#allocation2 + $0x188] sm:$0xff]   ;;  %v2586_v55 = vld [vmem:[#allocation2 + $0x190] sm:$0xff]   ;;  %v2587_v56 = vld [vmem:[#allocation2 + $0x158] sm:$0xff]  }
  0x5d   :  { %v2588_v57 = vld [vmem:[#allocation2 + $0x1d8] sm:$0xff]   ;;  %v2591_v60 = vld [vmem:[#allocation2 + $0x160] sm:$0xff]   ;;  %v2595_v0 = vld [vmem:[#allocation2 + $0x168] sm:$0xff]  }
  0x5e   :  { %2329 = vmatpush3.bf16.msra.mxu0 %v2561_v18  ;;  %v2589_v58 = vld [vmem:[#allocation2 + $0x118] sm:$0xff]   ;;  %v2592_v61 = vld [vmem:[#allocation2 + $0x1e0] sm:$0xff]   ;;  %v2596_v1 = vld [vmem:[#allocation2 + $0x1e8] sm:$0xff]  }
  0x5f   :  { %2351 = vmatpush3.bf16.msra.mxu1 %v2562_v19  ;;  %2330 = vmatprep.subr.bf16.mxu0 %v2563_v20  ;;  %v2590_v59 = vld [vmem:[#allocation2 + $0x198] sm:$0xff]   ;;  %v2593_v62 = vld [vmem:[#allocation2 + $0x120] sm:$0xff]   ;;  %v2597_v2 = vld [vmem:[#allocation2 + $0x128] sm:$0xff]  }
  0x60   :  { %2352 = vmatprep.subr.bf16.mxu1 %v2564_v21  ;;  %v2594_v63 = vld [vmem:[#allocation2 + $0x1a0] sm:$0xff]   ;;  %v2598_v3 = vld [vmem:[#allocation2 + $0x1a8] sm:$0xff]   ;;  %v2599_v4 = vld [vmem:[#allocation2 + $0x170] sm:$0xff]  }
  0x61   :  { %v2600_v5 = vld [vmem:[#allocation2 + $0x1f0] sm:$0xff]   ;;  %v2603_v8 = vld [vmem:[#allocation2 + $0x178] sm:$0xff]   ;;  %v101_v12 = vld [vmem:[%s3221_s0 + $0x28] sm:$0xff] }
  0x62   :  { %2331 = vmatpush3.bf16.msra.mxu0 %v2565_v22  ;;  %v2601_v6 = vld [vmem:[#allocation2 + $0x130] sm:$0xff]   ;;  %v2604_v9 = vld [vmem:[#allocation2 + $0x1f8] sm:$0xff]   ;;  %v109_v13 = vld [vmem:[%s3221_s0 + $0x68] sm:$0xff] }
  0x63   :  { %2353 = vmatpush3.bf16.msra.mxu1 %v2566_v23  ;;  %2332 = vmatprep.subr.bf16.mxu0 %v2567_v24  ;;  %v2602_v7 = vld [vmem:[#allocation2 + $0x1b0] sm:$0xff]   ;;  %v2605_v10 = vld [vmem:[#allocation2 + $0x138] sm:$0xff]   ;;  %v117_v16 = vpack.c.bf16 %v109_v13, %v101_v12  ;;  %v100_v18 = vld [vmem:[%s3221_s0 + $0x20] sm:$0xff] }
  0x64   :  { %2354 = vmatprep.subr.bf16.mxu1 %v2568_v25  ;;  %v2606_v11 = vld [vmem:[#allocation2 + $0x1b8] sm:$0xff]   ;;  %v108_v19 = vld [vmem:[%s3221_s0 + $0x60] sm:$0xff]  ;;  %v102_v20 = vld [vmem:[%s3221_s0 + $0x30] sm:$0xff]  ;;  %v2828_v25 = vmov 0.0  }
  0x65   :  { %v103_v14 = vld [vmem:[%s3221_s0 + $0x38] sm:$0xff]  ;;  %v116_v21 = vpack.c.bf16 %v108_v19, %v100_v18  ;;  %v110_v22 = vld [vmem:[%s3221_s0 + $0x70] sm:$0xff]  ;;  %v2607_v24 = vld [vmem:[#allocation5] sm:$0xff]  }
  0x66   :  { %2333 = vmatpush3.bf16.msra.mxu0 %v2569_v26  ;;  %v111_v15 = vld [vmem:[%s3221_s0 + $0x78] sm:$0xff]  ;;  %v118_v23 = vpack.c.bf16 %v110_v22, %v102_v20  ;;  %v2608_v26 = vld [vmem:[#allocation5 + $0x8] sm:$0xff]   ;;  %v2615_v33 = vld [vmem:[%s3225_s4] sm:$0xff]  }
  0x67   :  { %2355 = vmatpush3.bf16.msra.mxu1 %v2570_v27  ;;  %2334 = vmatprep.subr.bf16.mxu0 %v2571_v28  ;;  %v119_v17 = vpack.c.bf16 %v111_v15, %v103_v14  ;;  %v2609_v27 = vld [vmem:[#allocation5 + $0x10] sm:$0xff]   ;;  %v2610_v28 = vld [vmem:[#allocation5 + $0x18] sm:$0xff]   ;;  %v2616_v34 = vld [vmem:[%s3225_s4 + $0x8] sm:$0xff]  }
  0x68   :  { %2356 = vmatprep.subr.bf16.mxu1 %v2572_v29  ;;  %v2611_v29 = vld [vmem:[#allocation5 + $0x20] sm:$0xff]   ;;  %v2614_v32 = vld [vmem:[#allocation5 + $0x38] sm:$0xff]   ;;  %v2617_v35 = vld [vmem:[%s3225_s4 + $0x10] sm:$0xff]  }
  0x69   :  { %v2618_v36 = vld [vmem:[%s3225_s4 + $0x18] sm:$0xff]   ;;  %v2619_v37 = vld [vmem:[%s3225_s4 + $0x20] sm:$0xff]   ;;  %v2620_v38 = vld [vmem:[%s3225_s4 + $0x28] sm:$0xff]  }
  0x6a   :  { %2335 = vmatpush3.bf16.msra.mxu0 %v2573_v30  ;;  %v2612_v30 = vld [vmem:[#allocation5 + $0x28] sm:$0xff]   ;;  %v2143_v41 = vld [vmem:[%s3230_s9] ss:$0 sm:$0xff]  ;;  %v2622_v12 = vld [vmem:[%s3225_s4 + $0x38] sm:$0xff]  }
  0x6b   :  { %2357 = vmatpush3.bf16.msra.mxu1 %v2574_v31  ;;  %2364 = vmatprep.subr.bf16.mxu0 %v2575_v44  ;;  %v2613_v31 = vld [vmem:[#allocation5 + $0x30] sm:$0xff]   ;;  %v1043_v13 = vld [vmem:[%s3222_s1] sm:$0xff]  ;;  %v1044_v14 = vld [vmem:[%s3222_s1 + $0x8] sm:$0xff] }
  0x6c   :  { %2386 = vmatprep.subr.bf16.mxu1 %v2576_v45  ;;  %1047 = vrot.lane.b32.xlu0 %v1043_v13, %s2830_s20  ;;  %v2208_v15 = vld [vmem:[%s3230_s9 + $0x1] ss:$0 sm:$0xff] }
  0x6d   :  { %678 = vmatmul.mubr.bf16.vlgmr.msra.gmra.mrb[0].mxu0 %v112_v40  ;;  %v1288_v13 = vld [vmem:[#allocation8 + $0xe0] sm:$0xff] }
  0x6e   :  { %719 = vmatmul.mubr.bf16.vlgmr.msra.gmra.mrb[0].mxu1 %v114_v43  ;;  %2365 = vmatpush3.bf16.msra.mxu0 %v2577_v46 }
  0x6f   :  { %2387 = vmatpush3.bf16.msra.mxu1 %v2578_v47  ;;  %2366 = vmatprep.subr.bf16.mxu0 %v2579_v48 }
  0x70   :  { %2388 = vmatprep.subr.bf16.mxu1 %v2580_v49  ;;  %759 = vmatprep.mubr.bf16.mxu0 %v117_v16 }
  0x71   :  { %800 = vmatprep.mubr.bf16.mxu1 %v119_v17  ;;  %1049 = vrot.lane.b32.xlu0 %v1044_v14, %s2830_s20 }
  0x72   :  { %2367 = vmatpush3.bf16.msra.mxu0 %v2581_v50 }
  0x73   :  { %2389 = vmatpush3.bf16.msra.mxu1 %v2582_v51  ;;  %2368 = vmatprep.subr.bf16.mxu0 %v2583_v52 }
  0x74   :  { %2390 = vmatprep.subr.bf16.mxu1 %v2584_v53 }
  0x76   :  { %2369 = vmatpush3.bf16.msra.mxu0 %v2585_v54 }
  0x77   :  { %2391 = vmatpush3.bf16.msra.mxu1 %v2586_v55  ;;  %2370 = vmatprep.subr.bf16.mxu0 %v2587_v56 }
  0x78   :  { %2392 = vmatprep.subr.bf16.mxu1 %v2588_v57 }
  0x7a   :  { %2371 = vmatpush3.bf16.msra.mxu0 %v2589_v58 }
  0x7b   :  { %2393 = vmatpush3.bf16.msra.mxu1 %v2590_v59  ;;  %2372 = vmatprep.subr.bf16.mxu0 %v2591_v60 }
  0x7c   :  { %2394 = vmatprep.subr.bf16.mxu1 %v2592_v61 }
  0x7e   :  { %2373 = vmatpush3.bf16.msra.mxu0 %v2593_v62 }
  0x7f   :  { %2395 = vmatpush3.bf16.msra.mxu1 %v2594_v63  ;;  %2374 = vmatprep.subr.bf16.mxu0 %v2595_v0 }
  0x80   :  { %2396 = vmatprep.subr.bf16.mxu1 %v2596_v1 }
  0x82   :  { %2375 = vmatpush3.bf16.msra.mxu0 %v2597_v2 }
  0x83   :  { %2397 = vmatpush3.bf16.msra.mxu1 %v2598_v3  ;;  %2376 = vmatprep.subr.bf16.mxu0 %v2599_v4 }
  0x84   :  { %2398 = vmatprep.subr.bf16.mxu1 %v2600_v5 }
  0x86   :  { %2377 = vmatpush3.bf16.msra.mxu0 %v2601_v6 }
  0x87   :  { %2399 = vmatpush3.bf16.msra.mxu1 %v2602_v7  ;;  %2378 = vmatprep.subr.bf16.mxu0 %v2603_v8 }
  0x88   :  { %2400 = vmatprep.subr.bf16.mxu1 %v2604_v9 }
  0x8a   :  { %2379 = vmatpush3.bf16.msra.mxu0 %v2605_v10 }
  0x8b   :  { %2401 = vmatpush3.bf16.msra.mxu1 %v2606_v11  ;;  %2444 = vmatprep.subr.bf16.mxu0 %v2828_v25  ;;  %v2621_v11 = vld [vmem:[%s3225_s4 + $0x30] sm:$0xff]  }
  0x8c   :  { %2464 = vmatprep.subr.bf16.mxu1 %v2828_v25 }
  0x8d   :  { %760 = vmatmul.mubr.bf16.vlgmr.msra.gmra.mrb[4].mxu0 %v116_v21 }
  0x8e   :  { %801 = vmatmul.mubr.bf16.vlgmr.msra.gmra.mrb[4].mxu1 %v118_v23  ;;  %2445 = vmatpush3.bf16.msra.mxu0 %v2607_v24 }
  0x8f   :  { %2446 = vmatprep.subr.bf16.mxu0 %v2828_v25  ;;  %2460 = vmatprep.mubr.msk.bf16.mxu0 %vm2829_vm0, %v2828_v25 }
  0x90   :  { %2480 = vmatprep.mubr.msk.bf16.mxu1 %vm2829_vm0, %v2828_v25  ;;  %2465 = vmatpush3.bf16.msra.mxu1 %v2615_v33 }
  0x91   :  { %2466 = vmatprep.subr.bf16.mxu1 %v2828_v25 }
  0x92   :  { %2447 = vmatpush3.bf16.msra.mxu0 %v2608_v26  ;;  %v2623_v26 = vld [vmem:[%s3226_s5 + $0x4] ss:$8 sps:$4 sm:$0x3f]  }
  0x93   :  { %2448 = vmatprep.subr.bf16.mxu0 %v2828_v25 }
  0x94   :  { %2467 = vmatpush3.bf16.msra.mxu1 %v2616_v34 }
  0x95   :  { %2468 = vmatprep.subr.bf16.mxu1 %v2828_v25 }
  0x96   :  { %2449 = vmatpush3.bf16.msra.mxu0 %v2609_v27  ;;  %v2217_v27 = vld [vmem:[%s3230_s9 + $0x2] ss:$0 sm:$0xff] }
  0x97   :  { %2450 = vmatprep.subr.bf16.mxu0 %v2828_v25 }
  0x98   :  { %2469 = vmatpush3.bf16.msra.mxu1 %v2617_v35 }
  0x99   :  { %2470 = vmatprep.subr.bf16.mxu1 %v2828_v25 }
  0x9a   :  { %2451 = vmatpush3.bf16.msra.mxu0 %v2610_v28 }
  0x9b   :  { %2452 = vmatprep.subr.bf16.mxu0 %v2828_v25 }
  0x9c   :  { %2471 = vmatpush3.bf16.msra.mxu1 %v2618_v36 }
  0x9d   :  { %2472 = vmatprep.subr.bf16.mxu1 %v2828_v25 }
  0x9e   :  { %2453 = vmatpush3.bf16.msra.mxu0 %v2611_v29 }
  0x9f   :  { %2454 = vmatprep.subr.bf16.mxu0 %v2828_v25 }
  0xa0   :  { %2473 = vmatpush3.bf16.msra.mxu1 %v2619_v37 }
  0xa1   :  { %2474 = vmatprep.subr.bf16.mxu1 %v2828_v25 }
  0xa2   :  { %2455 = vmatpush3.bf16.msra.mxu0 %v2612_v30 }
  0xa3   :  { %2456 = vmatprep.subr.bf16.mxu0 %v2828_v25 }
  0xa4   :  { %2475 = vmatpush3.bf16.msra.mxu1 %v2620_v38  ;;  %v2625_v38 = vld [vmem:[%s3226_s5] ss:$8 sps:$4 sm:$0x3f]   ;;  %s2833_s5 = smov 28  }
  0xa5   :  { %2476 = vmatprep.subr.bf16.mxu1 %v2828_v25 }
  0xa6   :  { %2457 = vmatpush3.bf16.msra.mxu0 %v2613_v31 }
  0xa7   :  { %2458 = vmatprep.subr.bf16.mxu0 %v2828_v25 }
  0xa8   :  { %2477 = vmatpush3.bf16.msra.mxu1 %v2621_v11 }
  0xa9   :  { %2478 = vmatprep.subr.bf16.mxu1 %v2828_v25 }
  0xaa   :  { %2459 = vmatpush3.bf16.msra.mxu0 %v2614_v32 }
  0xab   :  { %2228 = vmatprep.subr.msk.bf16.mxu0 %vm1091_vm1, %v2623_v26 }
  0xac   :  { %2479 = vmatpush3.bf16.msra.mxu1 %v2622_v12  ;;  %v1284_v12 = vld [vmem:[#allocation8 + $0xc0] sm:$0xff] }
  0xad   :  { %2484 = vmatprep.subr.bf16.mxu1 %v2828_v25  ;;  %v2264_v14 = vcombine.high %v1284_v12, %v1288_v13 }
 0x140   :  { %v2336_v39 = vpop.f32.mrb[0].mxu0 }
 0x141   :  { %v2358_v40 = vpop.f32.mrb[0].mxu1  ;;  %v2337_v42 = vpop.f32.mrb[1].mxu0 }
 0x142   :  { %v2338_v43 = vadd.f32 %v2337_v42, %v2336_v39  ;;  %v2359_v44 = vpop.f32.mrb[1].mxu1  ;;  %v2339_v45 = vpop.f32.mrb[2].mxu0  ;;  %v1093_v39 = vsel %vm1091_vm1, %v2625_v38, 0 }
 0x143   :  { %v2360_v46 = vadd.f32 %v2359_v44, %v2358_v40  ;;  %v2361_v47 = vpop.f32.mrb[2].mxu1  ;;  %v2340_v48 = vpop.f32.mrb[3].mxu0 }
 0x144   :  { %v680_v49 = vadd.f32 %v2338_v43, %v2143_v41  ;;  %v2341_v50 = vadd.f32 %v2340_v48, %v2339_v45  ;;  %v2362_v51 = vpop.f32.mrb[3].mxu1  ;;  %v1048_v40 = vpop.permute.xlu0 %1047  ;;  %v2627_v48 = vld [vmem:[#allocation7 + $0x8] sm:$0xff]  }
 0x145   :  { %v2363_v52 = vadd.f32 %v2362_v51, %v2361_v47  ;;  %v2626_v47 = vld [vmem:[#allocation7] sm:$0xff]  }
 0x146   :  { %v721_v53 = vadd.f32 %v2360_v46, %v680_v49  ;;  %v683_v54 = vadd.f32 %v2341_v50, %v2143_v41  ;;  %v2831_v41 = vmov 0   ;;  %v2628_v50 = vld [vmem:[#allocation7 + $0x10] sm:$0xff]  }
 0x148   :  { %v724_v55 = vadd.f32 %v2363_v52, %v683_v54  ;;  %v1050_v45 = vpop.permute.xlu0 %1049 }
 0x160   :  { %v2380_v56 = vpop.f32.mrb[4].mxu0 }
 0x161   :  { %v2402_v57 = vpop.f32.mrb[4].mxu1  ;;  %v2381_v58 = vpop.f32.mrb[5].mxu0 }
 0x162   :  { %v2382_v59 = vadd.f32 %v2381_v58, %v2380_v56  ;;  %v2403_v60 = vpop.f32.mrb[5].mxu1  ;;  %v2383_v61 = vpop.f32.mrb[6].mxu0  ;;  %v2630_v56 = vld [vmem:[#allocation7 + $0x20] sm:$0xff]   ;;  %v2632_v58 = vld [vmem:[#allocation7 + $0x30] sm:$0xff]  }
 0x163   :  { %v2404_v62 = vadd.f32 %v2403_v60, %v2402_v57  ;;  %v2405_v63 = vpop.f32.mrb[6].mxu1  ;;  %v2384_v0 = vpop.f32.mrb[7].mxu0  ;;  %v2631_v57 = vld [vmem:[#allocation7 + $0x28] sm:$0xff]   ;;  %v1260_v60 = vld [vmem:[#allocation8] sm:$0xff] }
 0x164   :  { %v762_v1 = vadd.f32 %v2382_v59, %v721_v53  ;;  %v2385_v2 = vadd.f32 %v2384_v0, %v2383_v61  ;;  %v2406_v3 = vpop.f32.mrb[7].mxu1  ;;  %v2629_v53 = vld [vmem:[#allocation7 + $0x18] sm:$0xff]   ;;  %v1264_v61 = vld [vmem:[#allocation8 + $0x20] sm:$0xff] }
 0x165   :  { %v2407_v4 = vadd.f32 %v2406_v3, %v2405_v63  ;;  %v2633_v59 = vld [vmem:[#allocation7 + $0x38] sm:$0xff]   ;;  %v2239_v63 = vcombine.low %v1260_v60, %v1264_v61  ;;  %v2240_v0 = vcombine.high %v1260_v60, %v1264_v61  ;;  %v1272_v3 = vld [vmem:[#allocation8 + $0x60] sm:$0xff]  ;;  %v1293_v60 = vld [vmem:[#allocation8 + $0x108] sm:$0xff] }
 0x166   :  { %v803_v5 = vadd.f32 %v2404_v62, %v762_v1  ;;  %v765_v6 = vadd.f32 %v2385_v2, %v724_v55  ;;  %v3108_v62 = vld [vmem:[#allocation8 + $0x8] sm:$0xff]  ;;  %v1268_v2 = vld [vmem:[#allocation8 + $0x40] sm:$0xff] }
 0x167   :  { %v3110_v1 = vld [vmem:[#allocation8 + $0x28] sm:$0xff] }
 0x168   :  { %v806_v7 = vadd.f32 %v2407_v4, %v765_v6  ;;  %v809_v8 = vmax.f32 %v803_v5, 0.0  ;;  %v2241_v4 = vcombine.low %v3108_v62, %v3110_v1  ;;  %v2242_v5 = vcombine.high %v3108_v62, %v3110_v1  ;;  %v1297_v61 = vld [vmem:[#allocation8 + $0x128] sm:$0xff] }
 0x169   :  { %v2248_v6 = vcombine.high %v1268_v2, %v1272_v3  ;;  %v1305_v1 = vld [vmem:[#allocation8 + $0x168] sm:$0xff] }
 0x16a   :  { %v810_v9 = vmax.f32 %v806_v7, 0.0  ;;  %v2247_v7 = vcombine.low %v1268_v2, %v1272_v3  ;;  %v2273_v2 = vcombine.low %v1293_v60, %v1297_v61 }
 0x16c   :  { %v811_v10 = vpack.c.bf16 %v810_v9, %v809_v8  ;;  %v1276_v8 = vld [vmem:[#allocation8 + $0x80] sm:$0xff] }
 0x16d   :  { %v1280_v9 = vld [vmem:[#allocation8 + $0xa0] sm:$0xff] }
 0x16e   :  { %2461 = vmatmul.mubr.bf16.vlgmr.msra.gmra.mrb[8].mxu0 %v811_v10  ;;  %v2256_v10 = vcombine.high %v1276_v8, %v1280_v9  ;;  %v2255_v11 = vcombine.low %v1276_v8, %v1280_v9  ;;  %v1313_v9 = vld [vmem:[#allocation8 + $0x1a8] sm:$0xff] }
 0x16f   :  { %1099 = vmatpush1.bf16.msra.mxu0 %v1093_v39  ;;  %1130 = vmatprep.mubr.bf16.mxu0 %v2831_v41 }
 0x170   :  { %1685 = vmatprep.subr.bf16.mxu0 %v2240_v0  ;;  %v1301_v0 = vld [vmem:[#allocation8 + $0x148] sm:$0xff] }
 0x171   :  { %v2282_v3 = vcombine.high %v1301_v0, %v1305_v1 }
 0x241   :  { %v916_v16 = vpop.f32.mrb[8].mxu0 }
 0x242   :  { %v917_v17 = vadd.f32 %v2208_v15, %v916_v16  ;;  %v2462_v18 = vpop.f32.mrb[9].mxu0  ;;  %v1292_v16 = vld [vmem:[#allocation8 + $0x100] sm:$0xff] }
 0x243   :  { %v919_v19 = vpop.f32.mrb[10].mxu0 }
 0x244   :  { %v920_v20 = vadd.f32 %v2208_v15, %v919_v19  ;;  %v2463_v21 = vpop.f32.mrb[11].mxu0  ;;  %v923_v22 = vmax.f32 %v917_v17, 0.0  ;;  %v2263_v15 = vcombine.low %v1284_v12, %v1288_v13  ;;  %v1296_v17 = vld [vmem:[#allocation8 + $0x120] sm:$0xff] }
 0x245   :  { %v2272_v18 = vcombine.high %v1292_v16, %v1296_v17  ;;  %v2271_v19 = vcombine.low %v1292_v16, %v1296_v17  ;;  %v1304_v21 = vld [vmem:[#allocation8 + $0x160] sm:$0xff]  ;;  %v1321_v17 = vld [vmem:[#allocation8 + $0x1e8] sm:$0xff] }
 0x246   :  { %v924_v23 = vmax.f32 %v920_v20, 0.0  ;;  %v1300_v20 = vld [vmem:[#allocation8 + $0x140] sm:$0xff] }
 0x247   :  { %v1316_v13 = vld [vmem:[#allocation8 + $0x1c0] sm:$0xff] }
 0x248   :  { %v925_v24 = vpack.c.bf16 %v924_v23, %v923_v22  ;;  %v2280_v22 = vcombine.high %v1300_v20, %v1304_v21  ;;  %v2279_v23 = vcombine.low %v1300_v20, %v1304_v21  ;;  %v1262_v21 = vld [vmem:[#allocation8 + $0x10] sm:$0xff] }
 0x24a   :  { %2481 = vmatmul.mubr.bf16.vlgmr.msra.gmra.mrb[8].mxu1 %v925_v24  ;;  %v1069_v24 = vlaneseq }
 0x24b   :  { %2500 = vmatprep.mubr.msk.bf16.mxu1 %vm2829_vm0, %v2828_v25  ;;  %2485 = vmatpush3.bf16.msra.mxu1 %v2626_v47 }
 0x24c   :  { %2486 = vmatprep.subr.bf16.mxu1 %v2828_v25  ;;  %v3116_v26 = vshrl.u32 %v1069_v24, 7 }
 0x24f   :  { %2487 = vmatpush3.bf16.msra.mxu1 %v2627_v48 }
 0x250   :  { %2488 = vmatprep.subr.bf16.mxu1 %v2828_v25 }
 0x253   :  { %2489 = vmatpush3.bf16.msra.mxu1 %v2628_v50 }
 0x254   :  { %2490 = vmatprep.subr.bf16.mxu1 %v2828_v25 }
 0x257   :  { %2491 = vmatpush3.bf16.msra.mxu1 %v2629_v53  ;;  %v1281_v53 = vld [vmem:[#allocation8 + $0xa8] sm:$0xff] }
 0x258   :  { %2492 = vmatprep.subr.bf16.mxu1 %v2828_v25 }
 0x25b   :  { %2493 = vmatpush3.bf16.msra.mxu1 %v2630_v56  ;;  %v1285_v56 = vld [vmem:[#allocation8 + $0xc8] sm:$0xff] }
 0x25c   :  { %2494 = vmatprep.subr.bf16.mxu1 %v2828_v25 }
 0x25f   :  { %2495 = vmatpush3.bf16.msra.mxu1 %v2631_v57  ;;  %v1289_v57 = vld [vmem:[#allocation8 + $0xe8] sm:$0xff] }
 0x260   :  { %2496 = vmatprep.subr.bf16.mxu1 %v2828_v25  ;;  %v2265_v62 = vcombine.low %v1285_v56, %v1289_v57 }
 0x263   :  { %2497 = vmatpush3.bf16.msra.mxu1 %v2632_v58 }
 0x264   :  { %2498 = vmatprep.subr.bf16.mxu1 %v2828_v25 }
 0x267   :  { %2499 = vmatpush3.bf16.msra.mxu1 %v2633_v59  ;;  %v2266_v59 = vcombine.high %v1285_v56, %v1289_v57  ;;  %v1283_v56 = vld [vmem:[#allocation8 + $0xb8] sm:$0xff] }
 0x268   :  { %1728 = vmatprep.subr.bf16.mxu1 %v2242_v5  ;;  %v1308_v5 = vld [vmem:[#allocation8 + $0x180] sm:$0xff] }
 0x31d   :  { %v1030_v28 = vpop.f32.mrb[8].mxu1 }
 0x31e   :  { %v3087_v29 = vadd.f32 %v2217_v27, %v1030_v28  ;;  %v2482_v30 = vpop.f32.mrb[9].mxu1  ;;  %v123_v28 = vld [vmem:[%s3230_s9 + $0x3] sm:$0x3] }
 0x31f   :  { %v1033_v31 = vpop.f32.mrb[10].mxu1  ;;  %v1075_v30 = vsub.s32 1, %v3116_v26 }
 0x320   :  { %v1037_v32 = vmul.f32 0.5, %v3087_v29  ;;  %v3090_v33 = vadd.f32 %v2217_v27, %v1033_v31  ;;  %v2483_v34 = vpop.f32.mrb[11].mxu1  ;;  %v1071_v27 = vsub.s32 0, %v3116_v26 }
 0x322   :  { %v1039_v35 = vmul.f32 1.442695, %v1037_v32  ;;  %v1038_v36 = vmul.f32 0.5, %v3090_v33  ;;  %v1072_v31 = vrot.slane %v123_v28, %v1071_v27  ;;  %v1076_v32 = vrot.slane %v123_v28, %v1075_v30 }
 0x324   :  { %2642 = vpow2.f32 %v1039_v35  ;;  %v1041_v37 = vmul.f32 1.442695, %v1038_v36 }
 0x326   :  { %2644 = vpow2.f32 %v1041_v37 }
 0x32e   :  { %v2643_v42 = vpop.eup %2642 }
 0x32f   :  { %v1053_v43 = vmul.f32 %v2643_v42, %v1048_v40 }
 0x330   :  { %v2645_v44 = vpop.eup %2644 }
 0x331   :  { %1057 = vrot.lane.b32.xlu1 %v1053_v43, %s2832_s26  ;;  %v1054_v46 = vmul.f32 %v2645_v44, %v1050_v45  ;;  %v1269_v43 = vld [vmem:[#allocation8 + $0x48] sm:$0xff] }
 0x332   :  { %v1273_v44 = vld [vmem:[#allocation8 + $0x68] sm:$0xff] }
 0x333   :  { %v2250_v50 = vcombine.high %v1269_v43, %v1273_v44 }
 0x335   :  { %1059 = vrot.lane.b32.xlu1 %v1054_v46, %s2832_s26  ;;  %s2834_s26 = smov 40  }
 0x3a3   :  { %v1058_v49 = vpop.permute.xlu1 %1057 }
 0x3a4   :  { %v1063_v51 = vadd.f32 %v1058_v49, %v3087_v29 }
 0x3a6   :  { %2083 = vrot.lane.b32.xlu0 %v1063_v51, %s2833_s5 }
 0x3a7   :  { %v1060_v52 = vpop.permute.xlu1 %1059 }
 0x3a8   :  { %v1064_v54 = vadd.f32 %v1060_v52, %v3090_v33  ;;  %v1277_v52 = vld [vmem:[#allocation8 + $0x88] sm:$0xff] }
 0x3a9   :  { %v2257_v58 = vcombine.low %v1277_v52, %v1281_v53 }
 0x3aa   :  { %v1065_v55 = vpack.c.bf16 %v1064_v54, %v1063_v51  ;;  %2085 = vrot.lane.b32.xlu1 %v1064_v54, %s2833_s5  ;;  %v2249_v54 = vcombine.low %v1269_v43, %v1273_v44  ;;  %v1270_v43 = vld [vmem:[#allocation8 + $0x50] sm:$0xff]  ;;  %s2835_s5 = smov [#allocation10]  }
 0x3ab   :  { %v1274_v44 = vld [vmem:[#allocation8 + $0x70] sm:$0xff]  ;;  %s2113_s28 = sshll.u32 %s2835_s5, 4  ;;  %s2114_s28 = int_to_ptr.vmem [resolvable:$true] %s2113_s28 }
 0x3ac   :  { %2229 = vmatmul.mubr.msk.bf16.vlgmr.msra.gmra.mrb[12].mxu0 %vm1087_vm2, %v1065_v55  ;;  %v2258_v55 = vcombine.high %v1277_v52, %v1281_v53  ;;  %v1278_v53 = vld [vmem:[#allocation8 + $0x90] sm:$0xff]  ;;  %v2251_v57 = vcombine.low %v1270_v43, %v1274_v44  ;;  %p2771_p5 = scmp.lt.s32.totalorder %s2114_s28, %s2114_s28 }
 0x3ad   :  { %1717 = vmatprep.mubr.bf16.mxu0 %v2831_v41  ;;  %1686 = vmatpush1.bf16.msra.mxu0 %v2239_v63  ;;  %v2274_v63 = vcombine.high %v1293_v60, %v1297_v61  ;;  %v1286_v61 = vld [vmem:[#allocation8 + $0xd0] sm:$0xff] }
 0x3ae   :  { %1687 = vmatprep.subr.bf16.mxu0 %v2248_v6  ;;  %v1312_v6 = vld [vmem:[#allocation8 + $0x1a0] sm:$0xff] }
 0x3af   :  { %v2288_v8 = vcombine.high %v1308_v5, %v1312_v6 }
 0x3b1   :  { %1688 = vmatpush1.bf16.msra.mxu0 %v2247_v7  ;;  %v1309_v7 = vld [vmem:[#allocation8 + $0x188] sm:$0xff] }
 0x3b2   :  { %1689 = vmatprep.subr.bf16.mxu0 %v2256_v10  ;;  %v2287_v10 = vcombine.low %v1308_v5, %v1312_v6  ;;  %v2290_v12 = vcombine.high %v1309_v7, %v1313_v9  ;;  %v1294_v5 = vld [vmem:[#allocation8 + $0x110] sm:$0xff] }
 0x3b3   :  { %v1298_v6 = vld [vmem:[#allocation8 + $0x130] sm:$0xff] }
 0x3b5   :  { %1690 = vmatpush1.bf16.msra.mxu0 %v2255_v11  ;;  %v2289_v11 = vcombine.low %v1309_v7, %v1313_v9  ;;  %v1295_v7 = vld [vmem:[#allocation8 + $0x118] sm:$0xff] }
 0x3b6   :  { %1691 = vmatprep.subr.bf16.mxu0 %v2264_v14  ;;  %v1320_v14 = vld [vmem:[#allocation8 + $0x1e0] sm:$0xff] }
 0x3b7   :  { %v2296_v16 = vcombine.high %v1316_v13, %v1320_v14 }
 0x3b9   :  { %1692 = vmatpush1.bf16.msra.mxu0 %v2263_v15  ;;  %v1317_v15 = vld [vmem:[#allocation8 + $0x1c8] sm:$0xff] }
 0x3ba   :  { %1693 = vmatprep.subr.bf16.mxu0 %v2272_v18  ;;  %v2295_v18 = vcombine.low %v1316_v13, %v1320_v14  ;;  %v2298_v20 = vcombine.high %v1317_v15, %v1321_v17  ;;  %v1306_v13 = vld [vmem:[#allocation8 + $0x170] sm:$0xff]  ;;  %v1303_v14 = vld [vmem:[#allocation8 + $0x158] sm:$0xff] }
 0x3bd   :  { %1694 = vmatpush1.bf16.msra.mxu0 %v2271_v19  ;;  %v2297_v19 = vcombine.low %v1317_v15, %v1321_v17  ;;  %v1307_v15 = vld [vmem:[#allocation8 + $0x178] sm:$0xff] }
 0x3be   :  { %1695 = vmatprep.subr.bf16.mxu0 %v2280_v22  ;;  %v1266_v22 = vld [vmem:[#allocation8 + $0x30] sm:$0xff] }
 0x3bf   :  { %v2243_v24 = vcombine.low %v1262_v21, %v1266_v22  ;;  %v2244_v28 = vcombine.high %v1262_v21, %v1266_v22  ;;  %v1314_v21 = vld [vmem:[#allocation8 + $0x1b0] sm:$0xff]  ;;  %v1311_v22 = vld [vmem:[#allocation8 + $0x198] sm:$0xff] }
 0x3c1   :  { %1696 = vmatpush1.bf16.msra.mxu0 %v2279_v23  ;;  %v1263_v23 = vld [vmem:[#allocation8 + $0x18] sm:$0xff] }
 0x3c2   :  { %1697 = vmatprep.subr.bf16.mxu0 %v2288_v8  ;;  %v1299_v8 = vld [vmem:[#allocation8 + $0x138] sm:$0xff] }
 0x3c3   :  { %v2277_v17 = vcombine.low %v1295_v7, %v1299_v8 }
 0x3c5   :  { %1698 = vmatpush1.bf16.msra.mxu0 %v2287_v10 }
 0x3c6   :  { %1699 = vmatprep.subr.bf16.mxu0 %v2296_v16  ;;  %v2275_v16 = vcombine.low %v1294_v5, %v1298_v6 }
 0x3c9   :  { %1700 = vmatpush1.bf16.msra.mxu0 %v2295_v18 }
 0x3ca   :  { %1771 = vmatprep.subr.bf16.mxu0 %v2244_v28  ;;  %v2285_v28 = vcombine.low %v1303_v14, %v1307_v15 }
 0x47f   :  { %v1132_v34 = vpop.f32.mrb[12].mxu0 }
 0x480   :  { %v1133_v35 = vadd.f32 %v1132_v34, %v1072_v31  ;;  %v1134_v36 = vpop.f32.mrb[13].mxu0 }
 0x481   :  { %v1135_v37 = vadd.f32 %v1134_v36, %v1076_v32  ;;  %v1136_v38 = vpop.f32.mrb[14].mxu0 }
 0x482   :  { %v1137_v39 = vadd.f32 %v1136_v38, %v1072_v31  ;;  %v1138_v40 = vpop.f32.mrb[15].mxu0  ;;  %v1141_v45 = vmax.f32 %v1133_v35, 0.0  ;;  %v1267_v31 = vld [vmem:[#allocation8 + $0x38] sm:$0xff]  ;;  %v2230_v35 = vld [vmem:[%s3230_s9 + $0x5] ss:$0 sm:$0xff] }
 0x483   :  { %v1139_v42 = vadd.f32 %v1138_v40, %v1076_v32  ;;  %v1142_v47 = vmax.f32 %v1135_v37, 0.0  ;;  %v2245_v32 = vcombine.low %v1263_v23, %v1267_v31  ;;  %v2246_v34 = vcombine.high %v1263_v23, %v1267_v31  ;;  %v1315_v23 = vld [vmem:[#allocation8 + $0x1b8] sm:$0xff] }
 0x484   :  { %v1143_v46 = vmax.f32 %v1137_v39, 0.0 }
 0x485   :  { %v1144_v48 = vmax.f32 %v1139_v42, 0.0 }
 0x486   :  { %v1145_v49 = vpack.c.bf16 %v1143_v46, %v1141_v45  ;;  %v1271_v45 = vld [vmem:[#allocation8 + $0x58] sm:$0xff] }
 0x487   :  { %v3127_v51 = vpack.c.bf16 %v1144_v48, %v1142_v47  ;;  %v1275_v46 = vld [vmem:[#allocation8 + $0x78] sm:$0xff] }
 0x488   :  { %2501 = vmatmul.mubr.bf16.vlgmr.msra.gmra.mrb[12].mxu1 %v1145_v49  ;;  %v2254_v52 = vcombine.high %v1271_v45, %v1275_v46 }
 0x489   :  { %1729 = vmatpush1.bf16.msra.mxu1 %v2241_v4  ;;  %1760 = vmatprep.mubr.bf16.mxu1 %v2831_v41  ;;  %v2281_v4 = vcombine.low %v1301_v0, %v1305_v1  ;;  %v1291_v0 = vld [vmem:[#allocation8 + $0xf8] sm:$0xff] }
 0x48a   :  { %1730 = vmatprep.subr.bf16.mxu1 %v2250_v50  ;;  %v2252_v50 = vcombine.high %v1270_v43, %v1274_v44 }
 0x48d   :  { %1731 = vmatpush1.bf16.msra.mxu1 %v2249_v54  ;;  %v1282_v54 = vld [vmem:[#allocation8 + $0xb0] sm:$0xff] }
 0x48e   :  { %1732 = vmatprep.subr.bf16.mxu1 %v2258_v55  ;;  %v1279_v55 = vld [vmem:[#allocation8 + $0x98] sm:$0xff]  ;;  %v2259_v1 = vcombine.low %v1278_v53, %v1282_v54 }
 0x48f   :  { %v2262_v60 = vcombine.high %v1279_v55, %v1283_v56 }
 0x491   :  { %1733 = vmatpush1.bf16.msra.mxu1 %v2257_v58  ;;  %v2253_v58 = vcombine.low %v1271_v45, %v1275_v46  ;;  %v2634_v45 = vld [vmem:[%s3229_s8] sm:$0xff]   ;;  %v2635_v46 = vld [vmem:[%s3229_s8 + $0x8] sm:$0xff]  }
 0x492   :  { %1734 = vmatprep.subr.bf16.mxu1 %v2266_v59  ;;  %v2260_v59 = vcombine.high %v1278_v53, %v1282_v54  ;;  %v2641_v53 = vld [vmem:[%s3229_s8 + $0x38] sm:$0xff]   ;;  %v1335_v54 = vsub.s32 2, %v3116_v26 }
 0x495   :  { %1735 = vmatpush1.bf16.msra.mxu1 %v2265_v62  ;;  %v1290_v62 = vld [vmem:[#allocation8 + $0xf0] sm:$0xff] }
 0x496   :  { %1736 = vmatprep.subr.bf16.mxu1 %v2274_v63  ;;  %v1287_v63 = vld [vmem:[#allocation8 + $0xd8] sm:$0xff]  ;;  %v2267_v9 = vcombine.low %v1286_v61, %v1290_v62 }
 0x497   :  { %v2269_v10 = vcombine.low %v1287_v63, %v1291_v0 }
 0x499   :  { %1737 = vmatpush1.bf16.msra.mxu1 %v2273_v2  ;;  %v2261_v2 = vcombine.low %v1279_v55, %v1283_v56  ;;  %v125_v55 = vld [vmem:[%s3230_s9 + $0x6] sm:$0xff]  ;;  %v1339_v56 = vsub.s32 3, %v3116_v26 }
 0x49a   :  { %1738 = vmatprep.subr.bf16.mxu1 %v2282_v3  ;;  %v2268_v3 = vcombine.high %v1286_v61, %v1290_v62 }
 0x49b   :  { %v1340_v61 = vrot.slane %v125_v55, %v1339_v56 }
 0x49d   :  { %1739 = vmatpush1.bf16.msra.mxu1 %v2281_v4  ;;  %v2270_v4 = vcombine.high %v1287_v63, %v1291_v0 }
 0x49e   :  { %1740 = vmatprep.subr.bf16.mxu1 %v2290_v12  ;;  %v1302_v12 = vld [vmem:[#allocation8 + $0x150] sm:$0xff] }
 0x49f   :  { %v2284_v18 = vcombine.high %v1302_v12, %v1306_v13 }
 0x4a1   :  { %1741 = vmatpush1.bf16.msra.mxu1 %v2289_v11  ;;  %v2276_v11 = vcombine.high %v1294_v5, %v1298_v6 }
 0x4a2   :  { %1742 = vmatprep.subr.bf16.mxu1 %v2298_v20  ;;  %v1310_v20 = vld [vmem:[#allocation8 + $0x190] sm:$0xff] }
 0x4a3   :  { %v2292_v31 = vcombine.high %v1310_v20, %v1314_v21 }
 0x4a5   :  { %1743 = vmatpush1.bf16.msra.mxu1 %v2297_v19  ;;  %v2286_v19 = vcombine.high %v1303_v14, %v1307_v15 }
 0x4a6   :  { %1814 = vmatprep.subr.bf16.mxu1 %v2246_v34  ;;  %v1318_v34 = vld [vmem:[#allocation8 + $0x1d0] sm:$0xff] }
 0x55b   :  { %v1250_v36 = vpop.f32.mrb[12].mxu1 }
 0x55c   :  { %v1251_v37 = vadd.f32 %v2230_v35, %v1250_v36  ;;  %v2502_v38 = vpop.f32.mrb[13].mxu1  ;;  %v1319_v36 = vld [vmem:[#allocation8 + $0x1d8] sm:$0xff] }
 0x55d   :  { %v1253_v39 = vpop.f32.mrb[14].mxu1  ;;  %v2291_v38 = vcombine.low %v1310_v20, %v1314_v21 }
 0x55e   :  { %v1254_v40 = vadd.f32 %v2230_v35, %v1253_v39  ;;  %v2503_v42 = vpop.f32.mrb[15].mxu1  ;;  %v1257_v47 = vmax.f32 %v1251_v37, 0.0  ;;  %v1322_v35 = vld [vmem:[#allocation8 + $0x1f0] sm:$0xff]  ;;  %v1323_v37 = vld [vmem:[#allocation8 + $0x1f8] sm:$0xff]  ;;  %v2293_v39 = vcombine.low %v1311_v22, %v1315_v23 }
 0x55f   :  { %v2302_v42 = vcombine.high %v1319_v36, %v1323_v37  ;;  %v2299_v43 = vcombine.low %v1318_v34, %v1322_v35  ;;  %v2301_v44 = vcombine.low %v1319_v36, %v1323_v37  ;;  %v1347_v36 = vsub.s32 5, %v3116_v26 }
 0x560   :  { %v1258_v48 = vmax.f32 %v1254_v40, 0.0  ;;  %v2300_v40 = vcombine.high %v1318_v34, %v1322_v35  ;;  %v1343_v34 = vsub.s32 4, %v3116_v26  ;;  %v1351_v35 = vsub.s32 6, %v3116_v26 }
 0x561   :  { %v1355_v37 = vsub.s32 7, %v3116_v26 }
 0x562   :  { %v3133_v49 = vpack.c.bf16 %v1258_v48, %v1257_v47  ;;  %v2636_v47 = vld [vmem:[%s3229_s8 + $0x10] sm:$0xff]   ;;  %v2637_v48 = vld [vmem:[%s3229_s8 + $0x18] sm:$0xff]  }
 0x564   :  { %1718 = vmatmul.mubr.bf16.vlgmr.msra.gmra.mrb[16].mxu0 %v3133_v49  ;;  %1761 = vmatmul.mubr.bf16.vlgmr.msra.gmra.mrb[16].mxu1 %v3133_v49 }
 0x565   :  { %1772 = vmatpush1.bf16.msra.mxu0 %v2243_v24  ;;  %1815 = vmatpush1.bf16.msra.mxu1 %v2245_v32  ;;  %v2283_v24 = vcombine.low %v1302_v12, %v1306_v13  ;;  %v2294_v32 = vcombine.high %v1311_v22, %v1315_v23 }
 0x566   :  { %1773 = vmatprep.subr.bf16.mxu0 %v2252_v50  ;;  %1816 = vmatprep.subr.bf16.mxu1 %v2254_v52  ;;  %v2639_v50 = vld [vmem:[%s3229_s8 + $0x28] sm:$0xff]   ;;  %v2640_v52 = vld [vmem:[%s3229_s8 + $0x30] sm:$0xff]  }
 0x567   :  { %1803 = vmatprep.mubr.bf16.mxu0 %v2831_v41  ;;  %1846 = vmatprep.mubr.bf16.mxu1 %v2831_v41  ;;  %v2278_v41 = vcombine.high %v1295_v7, %v1299_v8 }
 0x569   :  { %1774 = vmatpush1.bf16.msra.mxu0 %v2251_v57  ;;  %1817 = vmatpush1.bf16.msra.mxu1 %v2253_v58  ;;  %v1328_v57 = vrot.slane %v125_v55, %v1071_v27  ;;  %v1336_v58 = vrot.slane %v125_v55, %v1335_v54 }
 0x56a   :  { %1775 = vmatprep.subr.bf16.mxu0 %v2260_v59  ;;  %1818 = vmatprep.subr.bf16.mxu1 %v2262_v60 }
 0x56d   :  { %1776 = vmatpush1.bf16.msra.mxu0 %v2259_v1  ;;  %1819 = vmatpush1.bf16.msra.mxu1 %v2261_v2 }
 0x56e   :  { %1777 = vmatprep.subr.bf16.mxu0 %v2268_v3  ;;  %1820 = vmatprep.subr.bf16.mxu1 %v2270_v4 }
 0x571   :  { %1778 = vmatpush1.bf16.msra.mxu0 %v2267_v9  ;;  %1821 = vmatpush1.bf16.msra.mxu1 %v2269_v10 }
 0x572   :  { %1779 = vmatprep.subr.bf16.mxu0 %v2276_v11  ;;  %1822 = vmatprep.subr.bf16.mxu1 %v2278_v41 }
 0x575   :  { %1780 = vmatpush1.bf16.msra.mxu0 %v2275_v16  ;;  %1823 = vmatpush1.bf16.msra.mxu1 %v2277_v17 }
 0x576   :  { %1781 = vmatprep.subr.bf16.mxu0 %v2284_v18  ;;  %1824 = vmatprep.subr.bf16.mxu1 %v2286_v19 }
 0x579   :  { %1782 = vmatpush1.bf16.msra.mxu0 %v2283_v24  ;;  %1825 = vmatpush1.bf16.msra.mxu1 %v2285_v28 }
 0x57a   :  { %1783 = vmatprep.subr.bf16.mxu0 %v2292_v31  ;;  %1826 = vmatprep.subr.bf16.mxu1 %v2294_v32 }
 0x57d   :  { %1784 = vmatpush1.bf16.msra.mxu0 %v2291_v38  ;;  %1827 = vmatpush1.bf16.msra.mxu1 %v2293_v39  ;;  %v1344_v38 = vrot.slane %v125_v55, %v1343_v34  ;;  %v1352_v39 = vrot.slane %v125_v55, %v1351_v35 }
 0x57e   :  { %1785 = vmatprep.subr.bf16.mxu0 %v2300_v40  ;;  %1828 = vmatprep.subr.bf16.mxu1 %v2302_v42 }
 0x581   :  { %1786 = vmatpush1.bf16.msra.mxu0 %v2299_v43  ;;  %1829 = vmatpush1.bf16.msra.mxu1 %v2301_v44  ;;  %v1348_v43 = vrot.slane %v125_v55, %v1347_v36  ;;  %v1356_v44 = vrot.slane %v125_v55, %v1355_v37 }
 0x582   :  { %2504 = vmatprep.subr.bf16.mxu0 %v2828_v25 }
 0x584   :  { %1804 = vmatmul.mubr.bf16.vlgmr.msra.gmra.mrb[20].mxu0 %v3133_v49  ;;  %1847 = vmatmul.mubr.bf16.vlgmr.msra.gmra.mrb[20].mxu1 %v3133_v49  ;;  %v2638_v49 = vld [vmem:[%s3229_s8 + $0x20] sm:$0xff]  }
 0x585   :  { %2505 = vmatpush3.bf16.msra.mxu0 %v2634_v45  ;;  %2520 = vmatprep.mubr.msk.bf16.mxu0 %vm2829_vm0, %v2828_v25 }
 0x586   :  { %2506 = vmatprep.subr.bf16.mxu0 %v2828_v25 }
 0x589   :  { %2507 = vmatpush3.bf16.msra.mxu0 %v2635_v46 }
 0x58a   :  { %2508 = vmatprep.subr.bf16.mxu0 %v2828_v25 }
 0x58d   :  { %2509 = vmatpush3.bf16.msra.mxu0 %v2636_v47 }
 0x58e   :  { %2510 = vmatprep.subr.bf16.mxu0 %v2828_v25 }
 0x591   :  { %2511 = vmatpush3.bf16.msra.mxu0 %v2637_v48 }
 0x592   :  { %2512 = vmatprep.subr.bf16.mxu0 %v2828_v25 }
 0x595   :  { %2513 = vmatpush3.bf16.msra.mxu0 %v2638_v49 }
 0x596   :  { %2514 = vmatprep.subr.bf16.mxu0 %v2828_v25 }
 0x599   :  { %2515 = vmatpush3.bf16.msra.mxu0 %v2639_v50 }
 0x59a   :  { %2516 = vmatprep.subr.bf16.mxu0 %v2828_v25 }
 0x59d   :  { %2517 = vmatpush3.bf16.msra.mxu0 %v2640_v52 }
 0x59e   :  { %2518 = vmatprep.subr.bf16.mxu0 %v2828_v25  ;;  %v1332_v25 = vrot.slane %v125_v55, %v1075_v30 }
 0x5a1   :  { %2519 = vmatpush3.bf16.msra.mxu0 %v2641_v53 }
 0x5a4   :  { %2521 = vmatmul.mubr.bf16.vlgmr.msra.gmra.mrb[24].mxu0 %v3127_v51 }
 0x637   :  { %v1719_v59 = vpop.f32.mrb[16].mxu0  ;;  %v1762_v60 = vpop.f32.mrb[16].mxu1 }
 0x638   :  { %v1721_v62 = vpop.f32.mrb[17].mxu0  ;;  %v1764_v51 = vpop.f32.mrb[17].mxu1  ;;  %v1720_v1 = vadd.f32 %v1719_v59, %v1328_v57  ;;  %v1763_v2 = vadd.f32 %v1762_v60, %v1336_v58 }
 0x639   :  { %v1723_v63 = vpop.f32.mrb[18].mxu0  ;;  %v1766_v0 = vpop.f32.mrb[18].mxu1  ;;  %v1722_v7 = vadd.f32 %v1721_v62, %v1332_v25  ;;  %v1765_v8 = vadd.f32 %v1764_v51, %v1340_v61 }
 0x63a   :  { %v1724_v3 = vadd.f32 %v1723_v63, %v1328_v57  ;;  %v1767_v4 = vadd.f32 %v1766_v0, %v1336_v58  ;;  %v1725_v5 = vpop.f32.mrb[19].mxu0  ;;  %v1768_v6 = vpop.f32.mrb[19].mxu1 }
 0x63b   :  { %v1726_v27 = vadd.f32 %v1725_v5, %v1332_v25  ;;  %v1769_v9 = vadd.f32 %v1768_v6, %v1340_v61 }
 0x63c   :  { %v1857_v10 = vpack.c.bf16 %v1724_v3, %v1720_v1  ;;  %v1859_v11 = vpack.c.bf16 %v1767_v4, %v1763_v2 }
 0x63d   :  { %v1858_v41 = vpack.c.bf16 %v1726_v27, %v1722_v7  ;;  %v1860_v12 = vpack.c.bf16 %v1769_v9, %v1765_v8 }
 0x63e   :  { %v1865_v30 = vsub.bf16 0, %v1857_v10  ;;  %v1867_v13 = vsub.bf16 0, %v1859_v11 }
 0x63f   :  { %v1866_v14 = vsub.bf16 0, %v1858_v41  ;;  %v1868_v15 = vsub.bf16 0, %v1860_v12 }
 0x640   :  { %v1874_v16 = vmul.bf16 1069105081, %v1865_v30  ;;  %v1880_v17 = vmul.bf16 1069105081, %v1867_v13 }
 0x641   :  { %v1877_v18 = vmul.bf16 1069105081, %v1866_v14  ;;  %v1883_v19 = vmul.bf16 1069105081, %v1868_v15 }
 0x642   :  { %2646 = vpow.bf16 %v1874_v16 }
 0x643   :  { %2648 = vpow.bf16 %v1880_v17 }
 0x644   :  { %2650 = vpow.bf16 %v1877_v18 }
 0x645   :  { %2652 = vpow.bf16 %v1883_v19 }
 0x64d   :  { %v2647_v20 = vpop.eup %2646 }
 0x64e   :  { %v2649_v21 = vpop.eup %2648  ;;  %v1897_v22 = vadd.bf16 1065369472, %v2647_v20 }
 0x64f   :  { %v2651_v23 = vpop.eup %2650  ;;  %v1899_v24 = vadd.bf16 1065369472, %v2649_v21 }
 0x650   :  { %v2653_v28 = vpop.eup %2652  ;;  %2654 = vrcp.bf16 %v1897_v22  ;;  %v1898_v31 = vadd.bf16 1065369472, %v2651_v23  ;;  %v2311_v22 = vld [vmem:[%s3230_s9 + $0xe] ss:$0 sm:$0xff]  ;;  %s2766_s9 = scalar_lea.vmem %s2114_s28, 1024 }
 0x651   :  { %2656 = vrcp.bf16 %v1899_v24  ;;  %v1900_v32 = vadd.bf16 1065369472, %v2653_v28  ;;  %p2767_p4 = scmp.ne.s32.totalorder %s2114_s28, %s2766_s9  ;;  %p2772_p6 = scmp.lt.s32.totalorder %s2766_s9, %s2766_s9 }
 0x652   :  { %2658 = vrcp.bf16 %v1898_v31 }
 0x653   :  { %2660 = vrcp.bf16 %v1900_v32  ;;  %p2773_p7 = por %p2772_p6, %p2771_p5 }
 0x655   :  { %p2774_p8 = pnand %p2773_p7, %p2767_p4 }
 0x657   :  { %v1805_v40 = vpop.f32.mrb[20].mxu0  ;;  %v1848_v42 = vpop.f32.mrb[20].mxu1 }
 0x658   :  { %v1807_v45 = vpop.f32.mrb[21].mxu0  ;;  %v1850_v46 = vpop.f32.mrb[21].mxu1  ;;  %v1806_v49 = vadd.f32 %v1805_v40, %v1344_v38  ;;  %v1849_v50 = vadd.f32 %v1848_v42, %v1352_v39 }
 0x659   :  { %v1809_v47 = vpop.f32.mrb[22].mxu0  ;;  %v1852_v48 = vpop.f32.mrb[22].mxu1  ;;  %v1808_v58 = vadd.f32 %v1807_v45, %v1348_v43  ;;  %v1851_v59 = vadd.f32 %v1850_v46, %v1356_v44 }
 0x65a   :  { %v1810_v52 = vadd.f32 %v1809_v47, %v1344_v38  ;;  %v1853_v53 = vadd.f32 %v1852_v48, %v1352_v39  ;;  %v1811_v54 = vpop.f32.mrb[23].mxu0  ;;  %v1854_v56 = vpop.f32.mrb[23].mxu1 }
 0x65b   :  { %v2655_v57 = vpop.eup %2654  ;;  %v1812_v26 = vadd.f32 %v1811_v54, %v1348_v43  ;;  %v1855_v60 = vadd.f32 %v1854_v56, %v1356_v44 }
 0x65c   :  { %v2657_v25 = vpop.eup %2656  ;;  %v1906_v61 = vmul.bf16 1065369472, %v2655_v57  ;;  %v1861_v62 = vpack.c.bf16 %v1810_v52, %v1806_v49  ;;  %v1863_v51 = vpack.c.bf16 %v1853_v53, %v1849_v50 }
 0x65d   :  { %v2659_v55 = vpop.eup %2658  ;;  %v1910_v63 = vmul.bf16 1065369472, %v2657_v25  ;;  %v1862_v0 = vpack.c.bf16 %v1812_v26, %v1808_v58  ;;  %v1864_v1 = vpack.c.bf16 %v1855_v60, %v1851_v59 }
 0x65e   :  { %v2661_v2 = vpop.eup %2660  ;;  %v1908_v3 = vmul.bf16 1065369472, %v2659_v55  ;;  %v1869_v4 = vsub.bf16 0, %v1861_v62  ;;  %v1871_v5 = vsub.bf16 0, %v1863_v51 }
 0x65f   :  { %v1912_v6 = vmul.bf16 1065369472, %v2661_v2  ;;  %v1870_v7 = vsub.bf16 0, %v1862_v0  ;;  %v1872_v8 = vsub.bf16 0, %v1864_v1 }
 0x660   :  { %v2303_v27 = vcombine.low %v1906_v61, %v1908_v3  ;;  %v2307_v9 = vcombine.high %v1906_v61, %v1908_v3  ;;  %v1886_v10 = vmul.bf16 1069105081, %v1869_v4  ;;  %v1892_v11 = vmul.bf16 1069105081, %v1871_v5 }
 0x661   :  { %v2304_v41 = vcombine.low %v1910_v63, %v1912_v6  ;;  %v2308_v12 = vcombine.high %v1910_v63, %v1912_v6  ;;  %v1889_v30 = vmul.bf16 1069105081, %v1870_v7  ;;  %v1895_v13 = vmul.bf16 1069105081, %v1872_v8 }
 0x662   :  { %1961 = vst [vmem:[#allocation10] sm:$0xff] %v2303_v27  ;;  %1965 = vst [vmem:[#allocation10 + $0x20] sm:$0xff] %v2307_v9  ;;  %2662 = vpow.bf16 %v1886_v10 }
 0x663   :  { %1962 = vst [vmem:[#allocation10 + $0x8] sm:$0xff] %v2304_v41  ;;  %1966 = vst [vmem:[#allocation10 + $0x28] sm:$0xff] %v2308_v12  ;;  %2664 = vpow.bf16 %v1892_v11 }
 0x664   :  { %2666 = vpow.bf16 %v1889_v30 }
 0x665   :  { %2668 = vpow.bf16 %v1895_v13 }
 0x66d   :  { %v2663_v14 = vpop.eup %2662 }
 0x66e   :  { %v2665_v15 = vpop.eup %2664  ;;  %v1901_v16 = vadd.bf16 1065369472, %v2663_v14 }
 0x66f   :  { %v2667_v17 = vpop.eup %2666  ;;  %v1903_v18 = vadd.bf16 1065369472, %v2665_v15 }
 0x670   :  { %v2669_v19 = vpop.eup %2668  ;;  %2670 = vrcp.bf16 %v1901_v16  ;;  %v1902_v20 = vadd.bf16 1065369472, %v2667_v17 }
 0x671   :  { %2672 = vrcp.bf16 %v1903_v18  ;;  %v1904_v21 = vadd.bf16 1065369472, %v2669_v19 }
 0x672   :  { %2674 = vrcp.bf16 %v1902_v20 }
 0x673   :  { %2676 = vrcp.bf16 %v1904_v21 }
 0x677   :  { %v2074_v23 = vpop.f32.mrb[24].mxu0 }
 0x678   :  { %v2075_v24 = vadd.f32 %v2311_v22, %v2074_v23  ;;  %v2522_v28 = vpop.f32.mrb[25].mxu0 }
 0x679   :  { %v2077_v31 = vpop.f32.mrb[26].mxu0 }
 0x67a   :  { %v2078_v32 = vadd.f32 %v2311_v22, %v2077_v31  ;;  %2091 = vrot.lane.b32.xlu0 %v2075_v24, %s2834_s26  ;;  %v2523_v34 = vpop.f32.mrb[27].mxu0 }
 0x67b   :  { %v2671_v35 = vpop.eup %2670 }
 0x67c   :  { %v2673_v36 = vpop.eup %2672  ;;  %v1914_v37 = vmul.bf16 1065369472, %v2671_v35  ;;  %2093 = vrot.lane.b32.xlu1 %v2078_v32, %s2834_s26 }
 0x67d   :  { %v2675_v38 = vpop.eup %2674  ;;  %v1918_v39 = vmul.bf16 1065369472, %v2673_v36 }
 0x67e   :  { %v2677_v40 = vpop.eup %2676  ;;  %v1916_v42 = vmul.bf16 1065369472, %v2675_v38 }
 0x67f   :  { %v1920_v43 = vmul.bf16 1065369472, %v2677_v40 }
 0x680   :  { %v2305_v44 = vcombine.low %v1914_v37, %v1916_v42  ;;  %v2309_v45 = vcombine.high %v1914_v37, %v1916_v42 }
 0x681   :  { %v2306_v46 = vcombine.low %v1918_v39, %v1920_v43  ;;  %v2310_v47 = vcombine.high %v1918_v39, %v1920_v43 }
 0x682   :  { %1963 = vst [vmem:[#allocation10 + $0x10] sm:$0xff] %v2305_v44  ;;  %1967 = vst [vmem:[#allocation10 + $0x30] sm:$0xff] %v2309_v45 }
 0x683   :  { %1964 = vst [vmem:[#allocation10 + $0x18] sm:$0xff] %v2306_v46  ;;  %1968 = vst [vmem:[#allocation10 + $0x38] sm:$0xff] %v2310_v47 }
 0x684   :  { %2777 = shalt.err (!%p2774_p8)
}
 0x685   :  { %s2778_s7 = scalar_lea.hbm %s3231_s10, 1024 }
 0x686   :  { %p2779_p9 = scmp.ne.s32.totalorder %s3231_s10, %s2778_s7  ;;  %p2782_p10 = scmp.lt.u32.totalorder %s2778_s7, %s3231_s10 }
 0x688   :  { %p2784_p11 = pnand %p2782_p10, %p2779_p9 }
 0x68a   :  { %2787 = shalt.err (!%p2784_p11)
}
 0x68b   :  { %2119 = dma.vmem_to_hbm [thread:$0]  %s2114_s28, 1024, %s3231_s10, [#allocation4], %s2826_s6, %s2826_s6, %s2827_s29   ;;  %v2084_v48 = vpop.permute.xlu0 %2083  ;;  %vm2097_vm3 = vcmask 228352   ;;  %v2086_v49 = vpop.permute.xlu1 %2085  ;;  %vm2100_vm4 = vcmask 326656   ;;  %vm2103_vm5 = vcmask 359424  }
 0x68c   :  { %s2836_s17 = smov [#allocation11]   ;;  %v2098_v50 = vsel %vm2097_vm3, %v3087_v29, %v2084_v48  ;;  %v2099_v54 = vsel %vm2097_vm3, %v3090_v33, %v2086_v49 }
 0x68d   :  { %s2125_s2 = sshll.u32 %s2836_s17, 4  ;;  %s2126_s2 = int_to_ptr.vmem [resolvable:$true] %s2125_s2 }
 0x68e   :  { %s2788_s10 = scalar_lea.vmem %s2126_s2, 256  ;;  %p2793_p13 = scmp.lt.s32.totalorder %s2126_s2, %s2126_s2 }
 0x68f   :  { %p2789_p12 = scmp.ne.s32.totalorder %s2126_s2, %s2788_s10  ;;  %p2794_p0 = scmp.lt.s32.totalorder %s2788_s10, %s2788_s10 }
 0x691   :  { %p2795_p1 = por %p2794_p0, %p2793_p13 }
 0x693   :  { %p2796_p2 = pnand %p2795_p1, %p2789_p12 }
 0x6ec   :  { %v2092_v52 = vpop.permute.xlu0 %2091 }
 0x6ed   :  { %v2101_v53 = vsel %vm2100_vm4, %v2098_v50, %v2092_v52 }
 0x6ee   :  { %v2104_v56 = vsel %vm2103_vm5, %v2101_v53, 0.0  ;;  %v2094_v57 = vpop.permute.xlu1 %2093 }
 0x6ef   :  { %2106 = vst [vmem:[#allocation11] sm:$0xff] %v2104_v56  ;;  %v2102_v58 = vsel %vm2100_vm4, %v2099_v54, %v2094_v57 }
 0x6f0   :  { %v2105_v59 = vsel %vm2103_vm5, %v2102_v58, 0.0 }
 0x6f1   :  { %2107 = vst [vmem:[#allocation11 + $0x8] sm:$0xff] %v2105_v59 }
 0x6f2   :  { %2799 = shalt.err (!%p2796_p2)
}
 0x6f3   :  { %s2800_s20 = scalar_lea.hbm %s3232_s11, 256 }
 0x6f4   :  { %p2801_p3 = scmp.ne.s32.totalorder %s3232_s11, %s2800_s20  ;;  %p2804_p4 = scmp.lt.u32.totalorder %s2800_s20, %s3232_s11 }
 0x6f6   :  { %p2806_p5 = pnand %p2804_p4, %p2801_p3 }
 0x6f8   :  { %2809 = shalt.err (!%p2806_p5)
}
 0x6f9   :  { %s2837_s4 = smov 128   ;;  %s2838_s1 = smov 8  }
 0x6fa   :  { %2131 = dma.vmem_to_hbm [thread:$0]  %s2126_s2, 256, %s3232_s11, [#allocation12], %s2837_s4, %s2837_s4, %s2838_s1  }
 0x6fb   :  { %2816 = dma.done.wait [#allocation4], 1024  }
 0x6fc   :  { %2817 = vsyncadd [#allocation4], 4294966272 }
 0x6fd   :  { %2818 = dma.done.wait [#allocation12], 256  }
 0x6fe   :  { %2819 = vsyncadd [#allocation12], 4294967040 }
 0x6ff   :  { %2138 = vsyncpa [#allocation3], 1 }
 0x700   :  { %2139 = vsyncpa [#allocation6], 1 }
 0x701   :  { %2140 = vsyncpa [#allocation9], 1 }
 0x702   :  { %2141 = vsyncpa [#allocation4], 1 }
 0x703   :  { %2142 = vsyncpa [#allocation12], 1 }

</bundles_post_ra>
